<compile_context>
chip_gen: v6e
topology: v6e:2x2x1
jax: 0.10.0
libtpu: 0.0.40
codegen_flags: <defaults>
</compile_context>

<pallas_src>
import jax
import jax.numpy as jnp
from jax.experimental import pallas as pl
from jax.experimental.pallas import tpu as pltpu

# Small synthetic shapes consistent with the module's forward semantics.
B, CIN, COUT, H, W = 2, 3, 4, 16, 16
K = 3                                  # 3x3 conv
KK = CIN * K * K                       # 27 im2col taps
KKP = 32                               # taps padded to 32 (bf16-friendly)
HW = H * W                             # 256 (lane-dense working width)
F = COUT * H * W                       # flattened correlation size (stand-in for 331776)
NUM_CLASSES = 2


def corrnet_kernel(patches_ref, w_ref, b_ref, fcw_ref, fcb_ref, out_ref, feats_g):
    """One batch sample per grid step: fused conv -> correlation -> classifier."""
    # --- Both branches as ONE MXU matmul (block-diag weights, bf16 in / f32 acc)
    feat = jnp.maximum(
        jnp.dot(w_ref[...], patches_ref[0],
                preferred_element_type=jnp.float32) + b_ref[...], 0.0)   # (2C, HW) f32

    # --- Merged relayout (2C, HW) -> (2C, H, W), stored bf16 (correlation operands)
    feat_bf = feat.astype(jnp.bfloat16)
    for h in range(H):
        feats_g[:, h, :] = feat_bf[:, h * W:(h + 1) * W]

    feats = feats_g[...]                                   # (2C, H, W) bf16, one load
    rgb_g = feats[0:COUT]
    lwir_g = feats[COUT:]

    # --- Correlation: single batched contraction over channels (MXU, f32 acc)
    # torch.matmul semantics: corr[c] = rgb[c] @ lwir[c]
    corr = jnp.einsum('chw,cwk->chk', rgb_g, lwir_g,
                      preferred_element_type=jnp.float32)  # (C, H, W) f32

    # --- Classifier, fused & vectorized: logits[j] = <corr, fcw[j]> + fcb[j]
    prod = corr[None, :, :, :] * fcw_ref[...]              # (2, C, H, W) f32
    r = jnp.sum(prod, axis=3, keepdims=True)               # (2, C, H, 1) lane reduce
    r = jnp.sum(r, axis=2, keepdims=True)                  # (2, C, 1, 1) sublane reduce
    r = jnp.sum(r, axis=1, keepdims=True)                  # (2, 1, 1, 1)
    l0 = r[0:1, 0, 0, :] + fcb_ref[:, 0:1]                 # (1, 1)
    l1 = r[1:2, 0, 0, :] + fcb_ref[:, 1:2]                 # (1, 1)

    # --- Softmax over the 2 logits; single (1, 2) store
    m = jnp.maximum(l0, l1)
    e0 = jnp.exp(l0 - m)
    e1 = jnp.exp(l1 - m)
    inv = pl.reciprocal(e0 + e1, approx=False)             # EUP, effectively free
    out_ref[0] = jnp.concatenate([e0 * inv, e1 * inv], axis=-1)


def _im2col(x):
    """(B, CIN, H, W) -> (B, KKP, H*W) 'same'-padded 3x3 patch matrices (bf16).

    TODO(synk): at F=331776 scale build the 9 shifted taps in-kernel from the
    padded image instead (avoids the 9x HBM traffic inflation of host im2col).
    """
    xp = jnp.pad(x, ((0, 0), (0, 0), (1, 1), (1, 1)))
    taps = []
    for ci in range(CIN):
        for kh in range(K):
            for kw in range(K):
                taps.append(xp[:, ci, kh:kh + H, kw:kw + W].reshape(B, HW))
    t = jnp.stack(taps, axis=1)                            # (B, KK, HW)
    t = jnp.pad(t, ((0, 0), (0, KKP - KK), (0, 0)))        # (B, KKP, HW)
    return t.astype(jnp.bfloat16)


def _pack_conv_weights(wr, wl):
    """Block-diagonal bf16 weight (2*COUT, 2*KKP): rows 0..C-1 rgb, C..2C-1 lwir."""
    wr2 = jnp.pad(wr.reshape(COUT, KK), ((0, 0), (0, KKP - KK)))
    wl2 = jnp.pad(wl.reshape(COUT, KK), ((0, 0), (0, KKP - KK)))
    top = jnp.concatenate([wr2, jnp.zeros_like(wl2)], axis=1)
    bot = jnp.concatenate([jnp.zeros_like(wr2), wl2], axis=1)
    return jnp.concatenate([top, bot], axis=0).astype(jnp.bfloat16)


def corrnet_forward(rgb, lwir, params):
    wr, br, wl, bl, fcw, fcb = params

    # Host-side layout glue (free XLA work): bf16 K-stacked im2col patches,
    # block-diagonal bf16 conv weights, stacked f32 bias, classifier weight as
    # (2, COUT, H, W) so its flatten order matches corr.view(B, -1) on NCHW.
    patches = jnp.concatenate([_im2col(rgb), _im2col(lwir)], axis=1)   # (B, 2*KKP, HW)
    w_blk = _pack_conv_weights(wr, wl)                                 # (2C, 2*KKP) bf16
    b_all = jnp.concatenate([br, bl]).reshape(2 * COUT, 1)             # (2C, 1) f32
    fcw_g = fcw.T.reshape(NUM_CLASSES, COUT, H, W)
    fcb2 = fcb.reshape(1, NUM_CLASSES)

    out = pl.pallas_call(
        corrnet_kernel,
        out_shape=jax.ShapeDtypeStruct((B, 1, NUM_CLASSES), jnp.float32),
        grid=(B,),
        in_specs=[
            pl.BlockSpec((1, 2 * KKP, HW), lambda b: (b, 0, 0)),      # stacked patches
            pl.BlockSpec((2 * COUT, 2 * KKP), lambda b: (0, 0)),      # block-diag conv w
            pl.BlockSpec((2 * COUT, 1), lambda b: (0, 0)),            # stacked conv bias
            pl.BlockSpec((NUM_CLASSES, COUT, H, W),
                         lambda b: (0, 0, 0, 0)),                     # classifier w
            pl.BlockSpec((1, NUM_CLASSES), lambda b: (0, 0)),         # classifier b
        ],
        out_specs=pl.BlockSpec((1, 1, NUM_CLASSES), lambda b: (b, 0, 0)),
        scratch_shapes=[pltpu.VMEM((2 * COUT, H, W), jnp.bfloat16)],
        compiler_params=pltpu.CompilerParams(
            dimension_semantics=("parallel",)),
    )(patches, w_blk, b_all, fcw_g, fcb2)
    return out.reshape(B, NUM_CLASSES)


def reference_forward(rgb, lwir, params):
    """Pure-JAX reference of the same forward pass (for correctness check)."""
    wr, br, wl, bl, fcw, fcb = params

    def branch(x, w, bias):
        y = jax.lax.conv_general_dilated(
            x, w, window_strides=(1, 1), padding='SAME',
            dimension_numbers=('NCHW', 'OIHW', 'NCHW'))
        return jnp.maximum(y + bias[None, :, None, None], 0.0)

    r = branch(rgb, wr, br)
    l = branch(lwir, wl, bl)
    corr = jnp.einsum('bchw,bcwk->bchk', r, l)
    logits = corr.reshape(B, -1) @ fcw + fcb.reshape(1, NUM_CLASSES)
    return jax.nn.softmax(logits, axis=-1)


def init_params(key):
    ks = jax.random.split(key, 6)
    wr = 0.1 * jax.random.normal(ks[0], (COUT, CIN, K, K), jnp.float32)
    br = 0.1 * jax.random.normal(ks[1], (COUT,), jnp.float32)
    wl = 0.1 * jax.random.normal(ks[2], (COUT, CIN, K, K), jnp.float32)
    bl = 0.1 * jax.random.normal(ks[3], (COUT,), jnp.float32)
    fcw = 0.01 * jax.random.normal(ks[4], (F, NUM_CLASSES), jnp.float32)
    fcb = 0.01 * jax.random.normal(ks[5], (NUM_CLASSES,), jnp.float32)
    return wr, br, wl, bl, fcw, fcb


if __name__ == "__main__":
    key = jax.random.PRNGKey(0)
    kp, kr, kl = jax.random.split(key, 3)
    params = init_params(kp)

    rgb = jax.random.normal(kr, (B, CIN, H, W), jnp.float32)
    lwir = jax.random.normal(kl, (B, CIN, H, W), jnp.float32)

    out = corrnet_forward(rgb, lwir, params)
    out = jax.block_until_ready(out)

    ref = reference_forward(rgb, lwir, params)

    assert out.shape == (B, NUM_CLASSES), out.shape
    assert bool(jnp.all(jnp.isfinite(out)))
    # Softmax rows should sum to ~1 (exact reciprocal now used).
    assert bool(jnp.all(jnp.abs(jnp.sum(out, axis=-1) - 1.0) < 1e-3))
    # Match the pure-JAX f32 reference (bf16 conv/correlation operands => loose tol).
    assert bool(jnp.all(jnp.abs(out - ref) < 2e-2)), (out, ref)
    print("KERNEL_OK")
</pallas_src>

<mosaic_0001>
module attributes {stable_mosaic.version = 11 : i64} {
  func.func @corrnet_kernel(%arg0: i32, %arg1: memref<1x64x256xbf16, #tpu.memory_space<vmem>>, %arg2: memref<8x64xbf16, #tpu.memory_space<vmem>>, %arg3: memref<8x1xf32, #tpu.memory_space<vmem>>, %arg4: memref<2x4x16x16xf32, #tpu.memory_space<vmem>>, %arg5: memref<1x2xf32, #tpu.memory_space<vmem>>, %arg6: memref<1x1x2xf32, #tpu.memory_space<vmem>>, %arg7: memref<8x16x16xbf16, #tpu.memory_space<vmem>>) attributes {dimension_semantics = [#tpu.dimension_semantics<parallel>], iteration_bounds = array<i64: 2>, scalar_prefetch = 0 : i64, scratch_operands = 1 : i64, tpu.core_type = #tpu.core_type<tc>, window_params = [{transform_indices = @transform_0, window_bounds = array<i64: 1, 64, 256>}, {pipeline_mode = #tpu.pipeline_mode<synchronous>, transform_indices = @transform_1, window_bounds = array<i64: 8, 64>}, {pipeline_mode = #tpu.pipeline_mode<synchronous>, transform_indices = @transform_2, window_bounds = array<i64: 8, 1>}, {pipeline_mode = #tpu.pipeline_mode<synchronous>, transform_indices = @transform_3, window_bounds = array<i64: 2, 4, 16, 16>}, {pipeline_mode = #tpu.pipeline_mode<synchronous>, transform_indices = @transform_4, window_bounds = array<i64: 1, 2>}, {transform_indices = @transform_5, window_bounds = array<i64: 1, 1, 2>}]} {
    %c0 = arith.constant 0 : index
    %c0_0 = arith.constant 0 : index
    %0 = vector.load %arg2[%c0, %c0_0] : memref<8x64xbf16, #tpu.memory_space<vmem>>, vector<8x64xbf16>
    %c0_1 = arith.constant 0 : index
    %c0_2 = arith.constant 0 : index
    %c0_3 = arith.constant 0 : index
    %1 = vector.load %arg1[%c0_1, %c0_2, %c0_3] : memref<1x64x256xbf16, #tpu.memory_space<vmem>>, vector<1x64x256xbf16>
    %2 = vector.shape_cast %1 : vector<1x64x256xbf16> to vector<64x256xbf16>
    %cst = arith.constant dense<0.000000e+00> : vector<8x256xf32>
    %3 = tpu.matmul %0, %2, %cst {dimension_numbers = #tpu.dot_dimension_numbers<[1], [0], [0], [1], [0, 0, 1, 1], [], []>} : vector<8x64xbf16>, vector<64x256xbf16>, vector<8x256xf32> -> vector<8x256xf32>
    %c0_4 = arith.constant 0 : index
    %c0_5 = arith.constant 0 : index
    %4 = vector.load %arg3[%c0_4, %c0_5] : memref<8x1xf32, #tpu.memory_space<vmem>>, vector<8x1xf32>
    %5 = vector.broadcast %4 : vector<8x1xf32> to vector<8x256xf32>
    %6 = arith.addf %3, %5 : vector<8x256xf32>
    %cst_6 = arith.constant 0.000000e+00 : f32
    %7 = vector.broadcast %cst_6 : f32 to vector<8x256xf32>
    %8 = arith.maximumf %6, %7 : vector<8x256xf32>
    %9 = arith.truncf %8 : vector<8x256xf32> to vector<8x256xbf16>
    %10 = vector.extract_strided_slice %9 {offsets = [0, 0], sizes = [8, 16], strides = [1, 1]} : vector<8x256xbf16> to vector<8x16xbf16>
    %c0_7 = arith.constant 0 : index
    %c0_8 = arith.constant 0 : index
    %c0_9 = arith.constant 0 : index
    %11 = vector.load %arg7[%c0_7, %c0_8, %c0_9] : memref<8x16x16xbf16, #tpu.memory_space<vmem>>, vector<8x1x16xbf16>
    %12 = vector.shape_cast %11 : vector<8x1x16xbf16> to vector<8x16xbf16>
    %13 = vector.shape_cast %10 : vector<8x16xbf16> to vector<8x1x16xbf16>
    tpu.vector_store %arg7[%c0_7, %c0_8, %c0_9], %13 {strides = array<i32>} : memref<8x16x16xbf16, #tpu.memory_space<vmem>>, vector<8x1x16xbf16>,
    %14 = vector.extract_strided_slice %9 {offsets = [0, 16], sizes = [8, 16], strides = [1, 1]} : vector<8x256xbf16> to vector<8x16xbf16>
    %c0_10 = arith.constant 0 : index
    %c1 = arith.constant 1 : index
    %c0_11 = arith.constant 0 : index
    %15 = vector.load %arg7[%c0_10, %c1, %c0_11] : memref<8x16x16xbf16, #tpu.memory_space<vmem>>, vector<8x1x16xbf16>
    %16 = vector.shape_cast %15 : vector<8x1x16xbf16> to vector<8x16xbf16>
    %17 = vector.shape_cast %14 : vector<8x16xbf16> to vector<8x1x16xbf16>
    tpu.vector_store %arg7[%c0_10, %c1, %c0_11], %17 {strides = array<i32>} : memref<8x16x16xbf16, #tpu.memory_space<vmem>>, vector<8x1x16xbf16>,
    %18 = vector.extract_strided_slice %9 {offsets = [0, 32], sizes = [8, 16], strides = [1, 1]} : vector<8x256xbf16> to vector<8x16xbf16>
    %c0_12 = arith.constant 0 : index
    %c2 = arith.constant 2 : index
    %c0_13 = arith.constant 0 : index
    %19 = vector.load %arg7[%c0_12, %c2, %c0_13] : memref<8x16x16xbf16, #tpu.memory_space<vmem>>, vector<8x1x16xbf16>
    %20 = vector.shape_cast %19 : vector<8x1x16xbf16> to vector<8x16xbf16>
    %21 = vector.shape_cast %18 : vector<8x16xbf16> to vector<8x1x16xbf16>
    tpu.vector_store %arg7[%c0_12, %c2, %c0_13], %21 {strides = array<i32>} : memref<8x16x16xbf16, #tpu.memory_space<vmem>>, vector<8x1x16xbf16>,
    %22 = vector.extract_strided_slice %9 {offsets = [0, 48], sizes = [8, 16], strides = [1, 1]} : vector<8x256xbf16> to vector<8x16xbf16>
    %c0_14 = arith.constant 0 : index
    %c3 = arith.constant 3 : index
    %c0_15 = arith.constant 0 : index
    %23 = vector.load %arg7[%c0_14, %c3, %c0_15] : memref<8x16x16xbf16, #tpu.memory_space<vmem>>, vector<8x1x16xbf16>
    %24 = vector.shape_cast %23 : vector<8x1x16xbf16> to vector<8x16xbf16>
    %25 = vector.shape_cast %22 : vector<8x16xbf16> to vector<8x1x16xbf16>
    tpu.vector_store %arg7[%c0_14, %c3, %c0_15], %25 {strides = array<i32>} : memref<8x16x16xbf16, #tpu.memory_space<vmem>>, vector<8x1x16xbf16>,
    %26 = vector.extract_strided_slice %9 {offsets = [0, 64], sizes = [8, 16], strides = [1, 1]} : vector<8x256xbf16> to vector<8x16xbf16>
    %c0_16 = arith.constant 0 : index
    %c4 = arith.constant 4 : index
    %c0_17 = arith.constant 0 : index
    %27 = vector.load %arg7[%c0_16, %c4, %c0_17] : memref<8x16x16xbf16, #tpu.memory_space<vmem>>, vector<8x1x16xbf16>
    %28 = vector.shape_cast %27 : vector<8x1x16xbf16> to vector<8x16xbf16>
    %29 = vector.shape_cast %26 : vector<8x16xbf16> to vector<8x1x16xbf16>
    tpu.vector_store %arg7[%c0_16, %c4, %c0_17], %29 {strides = array<i32>} : memref<8x16x16xbf16, #tpu.memory_space<vmem>>, vector<8x1x16xbf16>,
    %30 = vector.extract_strided_slice %9 {offsets = [0, 80], sizes = [8, 16], strides = [1, 1]} : vector<8x256xbf16> to vector<8x16xbf16>
    %c0_18 = arith.constant 0 : index
    %c5 = arith.constant 5 : index
    %c0_19 = arith.constant 0 : index
    %31 = vector.load %arg7[%c0_18, %c5, %c0_19] : memref<8x16x16xbf16, #tpu.memory_space<vmem>>, vector<8x1x16xbf16>
    %32 = vector.shape_cast %31 : vector<8x1x16xbf16> to vector<8x16xbf16>
    %33 = vector.shape_cast %30 : vector<8x16xbf16> to vector<8x1x16xbf16>
    tpu.vector_store %arg7[%c0_18, %c5, %c0_19], %33 {strides = array<i32>} : memref<8x16x16xbf16, #tpu.memory_space<vmem>>, vector<8x1x16xbf16>,
    %34 = vector.extract_strided_slice %9 {offsets = [0, 96], sizes = [8, 16], strides = [1, 1]} : vector<8x256xbf16> to vector<8x16xbf16>
    %c0_20 = arith.constant 0 : index
    %c6 = arith.constant 6 : index
    %c0_21 = arith.constant 0 : index
    %35 = vector.load %arg7[%c0_20, %c6, %c0_21] : memref<8x16x16xbf16, #tpu.memory_space<vmem>>, vector<8x1x16xbf16>
    %36 = vector.shape_cast %35 : vector<8x1x16xbf16> to vector<8x16xbf16>
    %37 = vector.shape_cast %34 : vector<8x16xbf16> to vector<8x1x16xbf16>
    tpu.vector_store %arg7[%c0_20, %c6, %c0_21], %37 {strides = array<i32>} : memref<8x16x16xbf16, #tpu.memory_space<vmem>>, vector<8x1x16xbf16>,
    %38 = vector.extract_strided_slice %9 {offsets = [0, 112], sizes = [8, 16], strides = [1, 1]} : vector<8x256xbf16> to vector<8x16xbf16>
    %c0_22 = arith.constant 0 : index
    %c7 = arith.constant 7 : index
    %c0_23 = arith.constant 0 : index
    %39 = vector.load %arg7[%c0_22, %c7, %c0_23] : memref<8x16x16xbf16, #tpu.memory_space<vmem>>, vector<8x1x16xbf16>
    %40 = vector.shape_cast %39 : vector<8x1x16xbf16> to vector<8x16xbf16>
    %41 = vector.shape_cast %38 : vector<8x16xbf16> to vector<8x1x16xbf16>
    tpu.vector_store %arg7[%c0_22, %c7, %c0_23], %41 {strides = array<i32>} : memref<8x16x16xbf16, #tpu.memory_space<vmem>>, vector<8x1x16xbf16>,
    %42 = vector.extract_strided_slice %9 {offsets = [0, 128], sizes = [8, 16], strides = [1, 1]} : vector<8x256xbf16> to vector<8x16xbf16>
    %c0_24 = arith.constant 0 : index
    %c8 = arith.constant 8 : index
    %c0_25 = arith.constant 0 : index
    %43 = vector.load %arg7[%c0_24, %c8, %c0_25] : memref<8x16x16xbf16, #tpu.memory_space<vmem>>, vector<8x1x16xbf16>
    %44 = vector.shape_cast %43 : vector<8x1x16xbf16> to vector<8x16xbf16>
    %45 = vector.shape_cast %42 : vector<8x16xbf16> to vector<8x1x16xbf16>
    tpu.vector_store %arg7[%c0_24, %c8, %c0_25], %45 {strides = array<i32>} : memref<8x16x16xbf16, #tpu.memory_space<vmem>>, vector<8x1x16xbf16>,
    %46 = vector.extract_strided_slice %9 {offsets = [0, 144], sizes = [8, 16], strides = [1, 1]} : vector<8x256xbf16> to vector<8x16xbf16>
    %c0_26 = arith.constant 0 : index
    %c9 = arith.constant 9 : index
    %c0_27 = arith.constant 0 : index
    %47 = vector.load %arg7[%c0_26, %c9, %c0_27] : memref<8x16x16xbf16, #tpu.memory_space<vmem>>, vector<8x1x16xbf16>
    %48 = vector.shape_cast %47 : vector<8x1x16xbf16> to vector<8x16xbf16>
    %49 = vector.shape_cast %46 : vector<8x16xbf16> to vector<8x1x16xbf16>
    tpu.vector_store %arg7[%c0_26, %c9, %c0_27], %49 {strides = array<i32>} : memref<8x16x16xbf16, #tpu.memory_space<vmem>>, vector<8x1x16xbf16>,
    %50 = vector.extract_strided_slice %9 {offsets = [0, 160], sizes = [8, 16], strides = [1, 1]} : vector<8x256xbf16> to vector<8x16xbf16>
    %c0_28 = arith.constant 0 : index
    %c10 = arith.constant 10 : index
    %c0_29 = arith.constant 0 : index
    %51 = vector.load %arg7[%c0_28, %c10, %c0_29] : memref<8x16x16xbf16, #tpu.memory_space<vmem>>, vector<8x1x16xbf16>
    %52 = vector.shape_cast %51 : vector<8x1x16xbf16> to vector<8x16xbf16>
    %53 = vector.shape_cast %50 : vector<8x16xbf16> to vector<8x1x16xbf16>
    tpu.vector_store %arg7[%c0_28, %c10, %c0_29], %53 {strides = array<i32>} : memref<8x16x16xbf16, #tpu.memory_space<vmem>>, vector<8x1x16xbf16>,
    %54 = vector.extract_strided_slice %9 {offsets = [0, 176], sizes = [8, 16], strides = [1, 1]} : vector<8x256xbf16> to vector<8x16xbf16>
    %c0_30 = arith.constant 0 : index
    %c11 = arith.constant 11 : index
    %c0_31 = arith.constant 0 : index
    %55 = vector.load %arg7[%c0_30, %c11, %c0_31] : memref<8x16x16xbf16, #tpu.memory_space<vmem>>, vector<8x1x16xbf16>
    %56 = vector.shape_cast %55 : vector<8x1x16xbf16> to vector<8x16xbf16>
    %57 = vector.shape_cast %54 : vector<8x16xbf16> to vector<8x1x16xbf16>
    tpu.vector_store %arg7[%c0_30, %c11, %c0_31], %57 {strides = array<i32>} : memref<8x16x16xbf16, #tpu.memory_space<vmem>>, vector<8x1x16xbf16>,
    %58 = vector.extract_strided_slice %9 {offsets = [0, 192], sizes = [8, 16], strides = [1, 1]} : vector<8x256xbf16> to vector<8x16xbf16>
    %c0_32 = arith.constant 0 : index
    %c12 = arith.constant 12 : index
    %c0_33 = arith.constant 0 : index
    %59 = vector.load %arg7[%c0_32, %c12, %c0_33] : memref<8x16x16xbf16, #tpu.memory_space<vmem>>, vector<8x1x16xbf16>
    %60 = vector.shape_cast %59 : vector<8x1x16xbf16> to vector<8x16xbf16>
    %61 = vector.shape_cast %58 : vector<8x16xbf16> to vector<8x1x16xbf16>
    tpu.vector_store %arg7[%c0_32, %c12, %c0_33], %61 {strides = array<i32>} : memref<8x16x16xbf16, #tpu.memory_space<vmem>>, vector<8x1x16xbf16>,
    %62 = vector.extract_strided_slice %9 {offsets = [0, 208], sizes = [8, 16], strides = [1, 1]} : vector<8x256xbf16> to vector<8x16xbf16>
    %c0_34 = arith.constant 0 : index
    %c13 = arith.constant 13 : index
    %c0_35 = arith.constant 0 : index
    %63 = vector.load %arg7[%c0_34, %c13, %c0_35] : memref<8x16x16xbf16, #tpu.memory_space<vmem>>, vector<8x1x16xbf16>
    %64 = vector.shape_cast %63 : vector<8x1x16xbf16> to vector<8x16xbf16>
    %65 = vector.shape_cast %62 : vector<8x16xbf16> to vector<8x1x16xbf16>
    tpu.vector_store %arg7[%c0_34, %c13, %c0_35], %65 {strides = array<i32>} : memref<8x16x16xbf16, #tpu.memory_space<vmem>>, vector<8x1x16xbf16>,
    %66 = vector.extract_strided_slice %9 {offsets = [0, 224], sizes = [8, 16], strides = [1, 1]} : vector<8x256xbf16> to vector<8x16xbf16>
    %c0_36 = arith.constant 0 : index
    %c14 = arith.constant 14 : index
    %c0_37 = arith.constant 0 : index
    %67 = vector.load %arg7[%c0_36, %c14, %c0_37] : memref<8x16x16xbf16, #tpu.memory_space<vmem>>, vector<8x1x16xbf16>
    %68 = vector.shape_cast %67 : vector<8x1x16xbf16> to vector<8x16xbf16>
    %69 = vector.shape_cast %66 : vector<8x16xbf16> to vector<8x1x16xbf16>
    tpu.vector_store %arg7[%c0_36, %c14, %c0_37], %69 {strides = array<i32>} : memref<8x16x16xbf16, #tpu.memory_space<vmem>>, vector<8x1x16xbf16>,
    %70 = vector.extract_strided_slice %9 {offsets = [0, 240], sizes = [8, 16], strides = [1, 1]} : vector<8x256xbf16> to vector<8x16xbf16>
    %c0_38 = arith.constant 0 : index
    %c15 = arith.constant 15 : index
    %c0_39 = arith.constant 0 : index
    %71 = vector.load %arg7[%c0_38, %c15, %c0_39] : memref<8x16x16xbf16, #tpu.memory_space<vmem>>, vector<8x1x16xbf16>
    %72 = vector.shape_cast %71 : vector<8x1x16xbf16> to vector<8x16xbf16>
    %73 = vector.shape_cast %70 : vector<8x16xbf16> to vector<8x1x16xbf16>
    tpu.vector_store %arg7[%c0_38, %c15, %c0_39], %73 {strides = array<i32>} : memref<8x16x16xbf16, #tpu.memory_space<vmem>>, vector<8x1x16xbf16>,
    %c0_40 = arith.constant 0 : index
    %c0_41 = arith.constant 0 : index
    %c0_42 = arith.constant 0 : index
    %74 = vector.load %arg7[%c0_40, %c0_41, %c0_42] : memref<8x16x16xbf16, #tpu.memory_space<vmem>>, vector<8x16x16xbf16>
    %75 = vector.extract_strided_slice %74 {offsets = [0, 0, 0], sizes = [4, 16, 16], strides = [1, 1, 1]} : vector<8x16x16xbf16> to vector<4x16x16xbf16>
    %76 = vector.extract_strided_slice %74 {offsets = [4, 0, 0], sizes = [4, 16, 16], strides = [1, 1, 1]} : vector<8x16x16xbf16> to vector<4x16x16xbf16>
    "tpu.trace_start"() <{level = 10 : i32, message = "chw,cwk->chk"}> : () -> ()
    %cst_43 = arith.constant dense<0.000000e+00> : vector<4x16x16xf32>
    %77 = tpu.matmul %75, %76, %cst_43 {dimension_numbers = #tpu.dot_dimension_numbers<[2], [1], [1], [2], [0, 0, 0, 1, 1, 2], [0], [0]>} : vector<4x16x16xbf16>, vector<4x16x16xbf16>, vector<4x16x16xf32> -> vector<4x16x16xf32>
    "tpu.trace_stop"() : () -> ()
    %78 = vector.shape_cast %77 : vector<4x16x16xf32> to vector<1x4x16x16xf32>
    %c0_44 = arith.constant 0 : index
    %c0_45 = arith.constant 0 : index
    %c0_46 = arith.constant 0 : index
    %c0_47 = arith.constant 0 : index
    %79 = vector.load %arg4[%c0_44, %c0_45, %c0_46, %c0_47] : memref<2x4x16x16xf32, #tpu.memory_space<vmem>>, vector<2x4x16x16xf32>
    %80 = vector.broadcast %78 : vector<1x4x16x16xf32> to vector<2x4x16x16xf32>
    %81 = arith.mulf %80, %79 : vector<2x4x16x16xf32>
    %cst_48 = arith.constant dense<0.000000e+00> : vector<2x4x16xf32>
    %82 = vector.multi_reduction <add>, %81, %cst_48 [3] : vector<2x4x16x16xf32> to vector<2x4x16xf32>
    %83 = vector.shape_cast %82 : vector<2x4x16xf32> to vector<2x4x16x1xf32>
    %cst_49 = arith.constant dense<0.000000e+00> : vector<2x4x1xf32>
    %84 = vector.multi_reduction <add>, %83, %cst_49 [2] : vector<2x4x16x1xf32> to vector<2x4x1xf32>
    %85 = vector.shape_cast %84 : vector<2x4x1xf32> to vector<2x4x1x1xf32>
    %cst_50 = arith.constant dense<0.000000e+00> : vector<2x1x1xf32>
    %86 = vector.multi_reduction <add>, %85, %cst_50 [1] : vector<2x4x1x1xf32> to vector<2x1x1xf32>
    %87 = vector.shape_cast %86 : vector<2x1x1xf32> to vector<2x1x1x1xf32>
    %88 = vector.extract_strided_slice %87 {offsets = [0, 0, 0, 0], sizes = [1, 1, 1, 1], strides = [1, 1, 1, 1]} : vector<2x1x1x1xf32> to vector<1x1x1x1xf32>
    %89 = vector.shape_cast %88 : vector<1x1x1x1xf32> to vector<1x1xf32>
    %c0_51 = arith.constant 0 : index
    %c0_52 = arith.constant 0 : index
    %90 = vector.load %arg5[%c0_51, %c0_52] : memref<1x2xf32, #tpu.memory_space<vmem>>, vector<1x1xf32>
    %91 = arith.addf %89, %90 : vector<1x1xf32>
    %92 = vector.extract_strided_slice %87 {offsets = [1, 0, 0, 0], sizes = [1, 1, 1, 1], strides = [1, 1, 1, 1]} : vector<2x1x1x1xf32> to vector<1x1x1x1xf32>
    %93 = vector.shape_cast %92 : vector<1x1x1x1xf32> to vector<1x1xf32>
    %c0_53 = arith.constant 0 : index
    %c1_54 = arith.constant 1 : index
    %94 = vector.load %arg5[%c0_53, %c1_54] : memref<1x2xf32, #tpu.memory_space<vmem>>, vector<1x1xf32>
    %95 = arith.addf %93, %94 : vector<1x1xf32>
    %96 = arith.maximumf %91, %95 : vector<1x1xf32>
    %97 = arith.subf %91, %96 : vector<1x1xf32>
    %98 = math.exp %97 : vector<1x1xf32>
    %99 = arith.subf %95, %96 : vector<1x1xf32>
    %100 = math.exp %99 : vector<1x1xf32>
    %101 = arith.addf %98, %100 : vector<1x1xf32>
    %102 = tpu.reciprocal %101 : vector<1x1xf32> -> vector<1x1xf32>
    %103 = arith.mulf %98, %102 : vector<1x1xf32>
    %104 = arith.mulf %100, %102 : vector<1x1xf32>
    %105 = tpu.concatenate %103, %104 in 1 : vector<1x1xf32>, vector<1x1xf32> -> vector<1x2xf32>
    %c0_55 = arith.constant 0 : index
    %c0_56 = arith.constant 0 : index
    %c0_57 = arith.constant 0 : index
    %106 = vector.load %arg6[%c0_55, %c0_56, %c0_57] : memref<1x1x2xf32, #tpu.memory_space<vmem>>, vector<1x1x2xf32>
    %107 = vector.shape_cast %106 : vector<1x1x2xf32> to vector<1x2xf32>
    %108 = vector.shape_cast %105 : vector<1x2xf32> to vector<1x1x2xf32>
    tpu.vector_store %arg6[%c0_55, %c0_56, %c0_57], %108 {strides = array<i32>} : memref<1x1x2xf32, #tpu.memory_space<vmem>>, vector<1x1x2xf32>,
    return
  }
  func.func @transform_0(%arg0: i32) -> (i32, i32, i32) {
    %c0_i32 = arith.constant 0 : i32
    %c0_i32_0 = arith.constant 0 : i32
    %c0_i32_1 = arith.constant 0 : i32
    return %arg0, %c0_i32, %c0_i32_0 : i32, i32, i32
  }
  func.func @transform_1(%arg0: i32) -> (i32, i32) {
    %c0_i32 = arith.constant 0 : i32
    %c0_i32_0 = arith.constant 0 : i32
    %c0_i32_1 = arith.constant 0 : i32
    return %c0_i32, %c0_i32_0 : i32, i32
  }
  func.func @transform_2(%arg0: i32) -> (i32, i32) {
    %c0_i32 = arith.constant 0 : i32
    %c0_i32_0 = arith.constant 0 : i32
    %c0_i32_1 = arith.constant 0 : i32
    return %c0_i32, %c0_i32_0 : i32, i32
  }
  func.func @transform_3(%arg0: i32) -> (i32, i32, i32, i32) {
    %c0_i32 = arith.constant 0 : i32
    %c0_i32_0 = arith.constant 0 : i32
    %c0_i32_1 = arith.constant 0 : i32
    %c0_i32_2 = arith.constant 0 : i32
    %c0_i32_3 = arith.constant 0 : i32
    return %c0_i32, %c0_i32_0, %c0_i32_1, %c0_i32_2 : i32, i32, i32, i32
  }
  func.func @transform_4(%arg0: i32) -> (i32, i32) {
    %c0_i32 = arith.constant 0 : i32
    %c0_i32_0 = arith.constant 0 : i32
    %c0_i32_1 = arith.constant 0 : i32
    return %c0_i32, %c0_i32_0 : i32, i32
  }
  func.func @transform_5(%arg0: i32) -> (i32, i32, i32) {
    %c0_i32 = arith.constant 0 : i32
    %c0_i32_0 = arith.constant 0 : i32
    %c0_i32_1 = arith.constant 0 : i32
    return %arg0, %c0_i32, %c0_i32_0 : i32, i32, i32
  }
}

</mosaic_0001>

<bundles_post_ra>
// kernel: tpu_custom_call.1
= control target key start
LH: loop header
LB: loop body
LE: loop exit
PB: predicated region body
PF: predicated region fallthrough
CT: control target
= control target key end

     0   :  { %10 = vsyncpa [#allocation4], 0  ;;  %s2968_s0 = inlined_call_operand.hbm [shape: bf16[2,64,256], index: 0, kind: input, shape index: {}]   ;;  %s2969_s1 = inlined_call_operand.vmem [shape: bf16[8,64], index: 1, kind: input, shape index: {}]   ;;  %s2970_s2 = inlined_call_operand.vmem [shape: f32[8,1], index: 2, kind: input, shape index: {}]   ;;  %s2971_s3 = inlined_call_operand.hbm [shape: f32[2,4,16,16], index: 3, kind: input, shape index: {}]   ;;  %s2972_s4 = inlined_call_operand.vmem [shape: f32[1,2], index: 4, kind: input, shape index: {}]   ;;  %s2973_s5 = inlined_call_operand.hbm [shape: f32[2,1,2], index: 5, kind: output, shape index: {}]  }
   0x1   :  { %12 = vsyncpa [#allocation4 + $0x1], 0 }
   0x2   :  { %13 = vsyncpa [#allocation7], 0 }
   0x3   :  { %14 = vsyncpa [#allocation5], 0 }
   0x4   :  { %16 = vsyncpa [#allocation5 + $0x1], 0  ;;  %s2162_s18 = smov 0   ;;  %s2164_s19 = smov 0  }
   0x5   :  { %s2166_s20 = smov 0   ;;  %s2168_s21 = smov 0  }
   0x6 LB: > { %s2183_s22 = sadd.s32 4294967295, %s2111_s21   ;;  %s1814_s23 = sadd.s32 4294967294, %s2111_s21   ;;  %s2111_s21 = sphi %s2168_s21, %s3013_s21   ;;  %s2107_s20 = sphi %s2166_s20, %s3012_s20   ;;  %s2103_s19 = sphi %s2164_s19, %s3011_s19   ;;  %s2099_s18 = sphi %s2162_s18, %s3010_s18  }
   0x7   : > { %p42_p0 = scmp.ne.s32.totalorder %s2103_s19, %s2099_s18  ;;  %p2974_p1 = scmp.eq.s32.totalorder %s2183_s22, 0 }
   0x8   : > { %p156_p3 = scmp.eq.s32.totalorder %s1814_s23, 1  ;;  %p1815_p5 = scmp.ge.s32.totalorder %s2111_s21, 1 }
   0x9   : > { %p2192_p4 = por %p2974_p1, %p42_p0  ;;  %p163_p7 = scmp.lt.s32.totalorder %s2111_s21, 3 }
   0xa   : > { %p2197_p6 = por %p156_p3, %p42_p0  ;;  %s2113_s27 = smov [#allocation6]  }
   0xb   : > { %s2979_s24 = scalar_select %p2192_p4, 1, 0 }
   0xc   : > { %s2980_s25 = scalar_select %p2197_p6, 1, 0 }
   0xd   : > { %p2202_p8 = pnand %p1815_p5, %p163_p7  ;;  %s181_s28 = sshll.u32 %s2113_s27, 4  ;;  %s182_s28 = int_to_ptr.vmem [resolvable:$true] %s181_s28 }
   0xe   : > { %s2216_s30 = sadd.s32 1, %s2111_s21   ;;  %s29_s6 = sadd.s32 1, %s2107_s20 }
   0xf   : > { %s2981_s26 = scalar_select %p2202_p8, 1, 0 }
  0x10   : > { %p1897_p9 = pneg %p2202_p8  ;;  %s26_s7 = ssub.s32 %s2111_s21, %s2216_s30 }
  0x11   : > { %s2000_s8 = scalar_lea.vmem %s182_s28, 2048  ;;  %p2008_p5 = scmp.lt.s32.totalorder %s182_s28, %s182_s28 }
  0x12   : > { %p2211_p11 = pnand %p1897_p9, %p2974_p1  ;;  %p2001_p13 = scmp.ne.s32.totalorder %s182_s28, %s2000_s8 }
  0x13   : > { %p2009_p7 = scmp.lt.s32.totalorder %s2000_s8, %s2000_s8 }
  0x14   : > { %p1991_p12 = pneg %p2211_p11 }
  0x15   : > { %p2010_p10 = por %p2009_p7, %p2008_p5 }
  0x16   : > { %p2003_p0 = pnand %p2001_p13, %p1991_p12 }
  0x18   : > { %p2004_p3 = pneg %p2003_p0 }
  0x1a   : > { %p2011_p2 = pnand %p2010_p10, %p2004_p3 }
  0x1c   : > { %2014 = shalt.err (!%p2011_p2)
}
  0x1d   : > { %s2975_s9 = smov 128   ;;  %s2115_s10 = smov 8  }
  0x1e   : > { %1900 = dma.hbm_to_vmem [thread:$0]  (!%p2211_p11), %s2971_s3, 2048, %s182_s28, [#allocation7], %s2975_s9, %s2975_s9, %s2115_s10  }
  0x1f   : > { %p27_p2 = scmp.eq.s32.totalorder %s26_s7, 0  ;;  %p36_p9 = scmp.ne.s32.totalorder %s2107_s20, %s2103_s19 }
  0x20   : > { %p37_p10 = scmp.eq.s32.totalorder %s2111_s21, 0  ;;  %p1910_p12 = scmp.lt.s32.totalorder %s2111_s21, 2 }
  0x21   : > { %s2236_s13 = scalar_select %p27_p2, %s2107_s20, %s29_s6  }
  0x22   : > { %p38_p13 = por %p37_p10, %p36_p9  ;;  %p2983_p0 = scmp.eq.s32.totalorder %s2183_s22, 1 }
  0x23   : > { %s198_s15 = sand.u32 1, %s2107_s20   ;;  %s1856_s16 = sshll.u32 %s2111_s21, 10 }
  0x24   : > { %p2240_p3 = por %p2983_p0, %p36_p9  ;;  %s1818_s17 = sshll.u32 %s198_s15, 6 }
  0x25   : > { %s2249_s29 = scalar_lea.hbm %s2968_s0, %s1856_s16  ;;  %s202_s28 = scalar_lea.vmem [#allocation3], %s1818_s17 }
  0x26   : > { %s2984_s14 = scalar_select %p2240_p3, 1, 0 }
  0x27   : > { %s209_s6 = sshll.u32 %s202_s28, 4  ;;  %p2251_p11 = pnand %p1910_p12, %p38_p13  ;;  %s2255_s6 = int_to_ptr.vmem [resolvable:$true] %s209_s6 }
  0x28   : > { %s2257_s8 = scalar_lea.sflag [#allocation4], %s198_s15  ;;  %s2015_s11 = scalar_lea.hbm %s2249_s29, 1024 }
  0x29   : > { %p2016_p5 = scmp.ne.s32.totalorder %s2249_s29, %s2015_s11  ;;  %p2017_p7 = pneg %p2251_p11 }
  0x2a   : > { %s2020_s17 = scalar_lea.hbm %s2968_s0, 2048  ;;  %p2021_p10 = scmp.lt.s32.totalorder %s2249_s29, %s2968_s0 }
  0x2b   : > { %p2018_p2 = pnand %p2017_p7, %p2016_p5  ;;  %p2022_p12 = scmp.lt.s32.totalorder %s2020_s17, %s2015_s11 }
  0x2d   : > { %p2019_p9 = pneg %p2018_p2  ;;  %p2023_p13 = por %p2022_p12, %p2021_p10 }
  0x2f   : > { %p2024_p0 = pnand %p2023_p13, %p2019_p9 }
  0x31   : > { %2027 = shalt.err (!%p2024_p0)
}
  0x32   : > { %s2028_s15 = scalar_lea.vmem %s2255_s6, 1024  ;;  %s2116_s28 = smov [#allocation3]  }
  0x33   : > { %p2029_p1 = scmp.ne.s32.totalorder %s2255_s6, %s2028_s15  ;;  %s2033_s9 = sshll.u32 %s2116_s28, 4  ;;  %s2034_s9 = int_to_ptr.vmem [resolvable:$false] %s2033_s9 }
  0x34   : > { %s2035_s12 = scalar_lea.vmem %s2034_s9, 2048  ;;  %p2036_p2 = scmp.lt.s32.totalorder %s2255_s6, %s2034_s9 }
  0x35   : > { %p2031_p6 = pnand %p2029_p1, %p2017_p7  ;;  %p2037_p3 = scmp.lt.s32.totalorder %s2035_s12, %s2028_s15 }
  0x37   : > { %p2032_p5 = pneg %p2031_p6  ;;  %p2038_p4 = por %p2037_p3, %p2036_p2 }
  0x39   : > { %p2039_p8 = pnand %p2038_p4, %p2032_p5 }
  0x3b   : > { %2042 = shalt.err (!%p2039_p8)
}
  0x3c   : > { %s2986_s11 = smov 128   ;;  %p2987_p1 = scmp.ne.s32.totalorder %s2981_s26, 0 }
  0x3d   : > { %1904 = dma.hbm_to_vmem [thread:$0]  (!%p2251_p11), %s2249_s29, 1024, %s2255_s6, %s2257_s8, %s2986_s11, %s2986_s11, %s2115_s10  }
  0x3e   : > { %221 = sbr.rel (%p2987_p1) target bundleno = 1510 (0x5e6), region = 40  ;;  %s2284_s16 = sand.u32 (!%p2987_p1), 1, %s2103_s19  }
  0x3f   : > { %s1822_s9 = sshll.u32 (!%p2987_p1), %s2284_s16, 6  ;;  %s224_s17 = scalar_lea.sflag (!%p2987_p1), [#allocation4], %s2284_s16 }
  0x40   : > { %s227_s23 = scalar_lea.vmem (!%p2987_p1), [#allocation3], %s1822_s9  ;;  %p2988_p4 = scmp.ne.s32.totalorder (!%p2987_p1), %s2979_s24, 0 }
  0x43   : > { %2086 = dma.done.wait (%p2988_p4), %s224_s17, 1024  }
  0x44   : > { %2088 = vsyncadd (%p2988_p4), %s224_s17, 4294966272  ;;  %p2989_p6 = scmp.eq.s32.totalorder %s2183_s22, 0 }
  0x46   : > { %2090 = dma.done.wait (%p2989_p6), [#allocation7], 2048   ;;  %p2990_p8 = pmov %p2989_p6 }
  0x47   : > { %v2117_v0 = vmov 0   ;;  %v1963_v1 = vld [vmem:[%s227_s23 + $0x34] ss:$8 sps:$4 sm:$0xff]   ;;  %v1965_v2 = vld [vmem:[%s227_s23 + $0x30] ss:$8 sps:$4 sm:$0xff]   ;;  %v267_v6 = vld [vmem:[%s2970_s2] sm:$0xff]  ;;  %v366_v13 = vlaneseq }
  0x48   : > { %2092 = vsyncadd (%p2990_p8), [#allocation7], 4294965248  ;;  %349 = vmatprep.mubr.bf16.mxu0 %v2117_v0  ;;  %1962 = vset.pattern.permute.xlu0 %v2117_v0  ;;  %v1966_v3 = vld [vmem:[%s227_s23 + $0x24] ss:$8 sps:$4 sm:$0xff]   ;;  %v1968_v4 = vld [vmem:[%s227_s23 + $0x20] ss:$8 sps:$4 sm:$0xff]  }
  0x49   : > { %325 = vmatprep.subr.bf16.mxu0 %v1963_v1  ;;  %v1969_v5 = vld [vmem:[%s227_s23 + $0x14] ss:$8 sps:$4 sm:$0xff]   ;;  %270 = vperm.xlu0 %1962, %v267_v6   ;;  %v1971_v7 = vld [vmem:[%s227_s23 + $0x10] ss:$8 sps:$4 sm:$0xff]   ;;  %v1972_v8 = vld [vmem:[%s227_s23 + $0x4] ss:$8 sps:$4 sm:$0xff]  }
  0x4a   : > { %326 = vmatpush1.bf16.msra.mxu0 %v1965_v2  ;;  %v1974_v9 = vld [vmem:[%s227_s23] ss:$8 sps:$4 sm:$0xff]   ;;  %vm313_vm0 = vcmask 523264   ;;  %v2118_v11 = vmov 1966171168   ;;  %v367_v16 = vshrl.u32 %v366_v13, 7 }
  0x4b   : > { %327 = vmatprep.subr.bf16.mxu0 %v1966_v3  ;;  %v258_v10 = vld [vmem:[%s2969_s1] sm:$0xf]  ;;  %v364_v12 = vunpack.c.l.s4 %v2118_v11  ;;  %v2119_v19 = vmov 286326784   ;;  %vm467_vm1 = vcmask 122880   ;;  %s2120_s6 = smov 64   ;;  %s2121_s7 = smov 96  }
  0x4c   : > { %v404_v20 = vunpack.c.l.s4 %v2119_v19  ;;  %vm468_vm2 = vsmask.f32 256  ;;  %s2122_s8 = smov 80   ;;  %v952_v11 = vld [vmem:[#allocation2 + $0x4] sm:$0x1]  ;;  %s2123_s27 = smov 32  }
  0x4d   : > { %v365_v15 = vunpack.c.0.s8 %v364_v12  ;;  %vm2330_vm3 = vmand %vm467_vm1, %vm468_vm2  ;;  %s2124_s15 = smov 16   ;;  %s2125_s28 = smov 112   ;;  %vm2128_vm4 = vmmov 0   ;;  %vm669_vm5 = vcmask 124930   ;;  %vm670_vm6 = vsmask.f32 2304 }
  0x4e   : > { %328 = vmatpush1.bf16.msra.mxu0 %v1968_v4  ;;  %v405_v28 = vunpack.c.0.s8 %v404_v20  ;;  %v470_v4 = vld [vmem:[#allocation2] sm:$0x1]  ;;  %s2126_s12 = smov 48   ;;  %vm568_vm7 = vcmask 123905   ;;  %vm569_vm8 = vsmask.f32 1280  ;;  %vm2527_vm9 = vmand %vm669_vm5, %vm670_vm6 }
  0x4f   : > { %329 = vmatprep.subr.bf16.mxu0 %v1969_v5  ;;  %v368_v23 = vsub.s32 %v365_v15, %v367_v16  ;;  %vm2534_vm10 = vmand %vm568_vm7, %vm569_vm8  ;;  %vm770_vm11 = vcmask 125955   ;;  %vm771_vm12 = vsmask.f32 3328  ;;  %vm518_vm14 = vsmask.f32 7938  ;;  %s2129_s17 = smov 127  }
  0x50   : > { %v2302_v35 = vsub.s32 %v405_v28, %v367_v16  ;;  %v473_v16 = vld [vmem:[#allocation2 + $0x8] sm:$0x1]  ;;  %vm2547_vm13 = vmand %vm770_vm11, %vm771_vm12  ;;  %vm619_vm15 = vsmask.f32 7942  ;;  %vm821_vm6 = vsmask.f32 7950 }
  0x51   : > { %vm2563_vm2 = vmand %vm568_vm7, %vm619_vm15  ;;  %s2130_s23 = smov 1   ;;  %s1853_s26 = sshll.u32 %s2183_s22, 4  ;;  %vm1723_vm8 = vcmask 8192  }
  0x52   : > { %330 = vmatpush1.bf16.msra.mxu0 %v1971_v7  ;;  %vm2581_vm7 = vmand %vm770_vm11, %vm821_vm6  ;;  %s256_s24 = scalar_lea.vmem [#allocation8], %s2284_s16  ;;  %p3007_p11 = scmp.ne.s32.totalorder %s2984_s14, 0 }
  0x53   : > { %331 = vmatprep.subr.bf16.mxu0 %v1972_v8  ;;  %s1738_s10 = sshll.u32 %s256_s24, 4  ;;  %s2131_s22 = smov [#allocation8]   ;;  %s1739_s10 = int_to_ptr.vmem [resolvable:$true] %s1738_s10 }
  0x56   : > { %332 = vmatpush1.bf16.msra.mxu0 %v1974_v9 }
  0x59   : > { %1832 = vmatmul.mubr.msk.bf16.vlgmr.msra.gmra.mxu0 %vm313_vm0, %v258_v10  ;;  %v482_v10 = vld [vmem:[#allocation2 + $0x20] sm:$0x1]  ;;  %vm2558_vm0 = vmand %vm467_vm1, %vm518_vm14 }
  0xc4   : > { %v271_v14 = vpop.permute.xlu0 %270 }
 0x119   : > { %v351_v17 = vpop.f32.mrf.mxu0 }
 0x11a   : > { %v352_v18 = vadd.f32 %v351_v17, %v271_v14  ;;  %v476_v17 = vld [vmem:[#allocation2 + $0x10] sm:$0x1] }
 0x11b   : > { %v353_v21 = vpop.f32.mrf.mxu0 }
 0x11c   : > { %v358_v22 = vmax.f32 %v352_v18, 0.0  ;;  %v354_v24 = vadd.f32 %v353_v21, %v271_v14  ;;  %v964_v18 = vld [vmem:[#allocation2 + $0x24] sm:$0x1] }
 0x11d   : > { %v355_v25 = vpop.f32.mrf.mxu0 }
 0x11e   : > { %v360_v26 = vpack.c.bf16 %v358_v22, %v358_v22  ;;  %v359_v27 = vmax.f32 %v354_v24, 0.0  ;;  %v955_v24 = vld [vmem:[#allocation2 + $0xc] sm:$0x1]  ;;  %v488_v25 = vld [vmem:[#allocation2 + $0x30] sm:$0x1] }
 0x11f   : > { %v356_v29 = vpop.f32.mrf.mxu0 }
 0x120   : > { %v369_v30 = vrot.slane %v360_v26, %v368_v23  ;;  %v361_v31 = vpack.c.bf16 %v359_v27, %v359_v27 }
 0x122   : > { %v370_v32 = vcombine.high %v369_v30, %v369_v30  ;;  %v377_v33 = vrot.slane %v369_v30, %v368_v23  ;;  %v854_v34 = vrot.slane %v361_v31, %v368_v23  ;;  %v958_v30 = vld [vmem:[#allocation2 + $0x14] sm:$0x1]  ;;  %v479_v31 = vld [vmem:[#allocation2 + $0x18] sm:$0x1] }
 0x124   : > { %v384_v36 = vrot.slane %v370_v32, %v368_v23  ;;  %v385_v37 = vcombine.high %v377_v33, %v377_v33  ;;  %v388_v38 = vunpack.i.h.s16 %v377_v33  ;;  %v1833_v39 = vpack.i.b16 %v377_v33, %v377_v33  ;;  %v967_v32 = vld [vmem:[#allocation2 + $0x2c] sm:$0x1] }
 0x125   : > { %v855_v40 = vcombine.high %v854_v34, %v854_v34  ;;  %v862_v41 = vrot.slane %v854_v34, %v368_v23 }
 0x126   : > { %v386_v42 = vcombine.high %v384_v36, %v384_v36  ;;  %v390_v43 = vunpack.i.h.s16 %v384_v36  ;;  %v392_v44 = vunpack.i.h.s16 %v385_v37  ;;  %v396_v45 = vpack.i.b16 %v388_v38, %v388_v38  ;;  %v491_v38 = vld [vmem:[#allocation2 + $0x38] sm:$0x1] }
 0x127   : > { %v1834_v46 = vpack.i.b16 %v384_v36, %v384_v36  ;;  %v1835_v47 = vpack.i.b16 %v385_v37, %v385_v37  ;;  %v2305_v48 = vrot.slane %v1833_v39, %v2302_v35  ;;  %v869_v49 = vrot.slane %v855_v40, %v368_v23  ;;  %v485_v23 = vld [vmem:[#allocation2 + $0x28] sm:$0x1]  ;;  %v970_v37 = vld [vmem:[#allocation2 + $0x34] sm:$0x1]  ;;  %v961_v39 = vld [vmem:[#allocation2 + $0x1c] sm:$0x1] }
 0x128   : > { %v394_v50 = vunpack.i.h.s16 %v386_v42  ;;  %v398_v51 = vpack.i.b16 %v390_v43, %v390_v43  ;;  %v400_v52 = vpack.i.b16 %v392_v44, %v392_v44  ;;  %v1836_v53 = vpack.i.b16 %v386_v42, %v386_v42  ;;  %v973_v43 = vld [vmem:[#allocation2 + $0x3c] sm:$0x1] }
 0x129   : > { %v2308_v54 = vrot.slane %v396_v45, %v2302_v35  ;;  %v870_v55 = vcombine.high %v862_v41, %v862_v41  ;;  %645 = vrot.lane.b32.xlu0 %v2305_v48, %s2120_s6  ;;  %v2313_v57 = vrot.slane %v1834_v46, %v2302_v35  ;;  %v2319_v59 = vrot.slane %v1835_v47, %v2302_v35 }
 0x12a   : > { %v402_v56 = vpack.i.b16 %v394_v50, %v394_v50  ;;  %v2316_v58 = vrot.slane %v398_v51, %v2302_v35  ;;  %544 = vrot.lane.b32.xlu1 %v2305_v48, %s2121_s7  ;;  %v871_v60 = vcombine.high %v869_v49, %v869_v49  ;;  %v873_v61 = vunpack.i.h.s16 %v862_v41 }
 0x12b   : > { %v875_v62 = vunpack.i.h.s16 %v869_v49  ;;  %v877_v63 = vunpack.i.h.s16 %v870_v55  ;;  %v2324_v0 = vrot.slane %v400_v52, %v2302_v35  ;;  %v1837_v1 = vpack.i.b16 %v862_v41, %v862_v41 }
 0x12c   : > { %v1838_v2 = vpack.i.b16 %v869_v49, %v869_v49  ;;  %v1839_v3 = vpack.i.b16 %v870_v55, %v870_v55  ;;  %v879_v5 = vunpack.i.h.s16 %v871_v60  ;;  %v881_v6 = vpack.i.b16 %v873_v61, %v873_v61  ;;  %v672_v55 = vld [vmem:[#allocation2] sm:$0x4] }
 0x12d   : > { %v883_v7 = vpack.i.b16 %v875_v62, %v875_v62  ;;  %v885_v8 = vpack.i.b16 %v877_v63, %v877_v63  ;;  %595 = vrot.lane.b32.xlu0 %v2305_v48, %s2122_s8  ;;  %v2335_v12 = vrot.slane %v1836_v53, %v2302_v35  ;;  %v1840_v13 = vpack.i.b16 %v871_v60, %v871_v60 }
 0x12e   : > { %v2338_v14 = vrot.slane %v1837_v1, %v2302_v35  ;;  %v2341_v15 = vrot.slane %v1839_v3, %v2302_v35  ;;  %746 = vrot.lane.b32.xlu1 %v2305_v48, %s2123_s27  ;;  %v2346_v19 = vrot.slane %v402_v56, %v2302_v35  ;;  %v887_v20 = vpack.i.b16 %v879_v5, %v879_v5 }
 0x12f   : > { %v2349_v21 = vrot.slane %v881_v6, %v2302_v35  ;;  %v2352_v22 = vrot.slane %v1838_v2, %v2302_v35  ;;  %v2355_v26 = vrot.slane %v883_v7, %v2302_v35  ;;  %v2358_v27 = vrot.slane %v885_v8, %v2302_v35 }
 0x130   : > { %v2361_v28 = vrot.slane %v1840_v13, %v2302_v35  ;;  %v471_v29 = vsel %vm2330_vm3, %v2305_v48, %v470_v4  ;;  %v2367_v33 = vrot.slane %v887_v20, %v2302_v35  ;;  %v483_v34 = vsel %vm2330_vm3, %v2319_v59, %v482_v10 }
 0x131   : > { %797 = vrot.lane.b32.xlu0 %v2305_v48, %s2124_s15  ;;  %472 = vst [vmem:[#allocation2] sm:$0x1] %v471_v29  ;;  %v953_v36 = vsel %vm2330_vm3, %v2338_v14, %v952_v11  ;;  %484 = vst [vmem:[#allocation2 + $0x20] sm:$0x1] %v483_v34  ;;  %v474_v35 = vsel %vm2330_vm3, %v2308_v54, %v473_v16  ;;  %v477_v40 = vsel %vm2330_vm3, %v2313_v57, %v476_v17  ;;  %v583_v11 = vld [vmem:[#allocation2 + $0x20] sm:$0x2] }
 0x132   : > { %494 = vrot.lane.b32.xlu1 %v2305_v48, %s2125_s28  ;;  %954 = vst [vmem:[#allocation2 + $0x4] sm:$0x1] %v953_v36  ;;  %v965_v41 = vsel %vm2330_vm3, %v2341_v15, %v964_v18  ;;  %v486_v42 = vsel %vm2330_vm3, %v2324_v0, %v485_v23  ;;  %475 = vst [vmem:[#allocation2 + $0x8] sm:$0x1] %v474_v35  ;;  %v956_v44 = vsel %vm2330_vm3, %v2349_v21, %v955_v24  ;;  %v1048_v24 = vld [vmem:[#allocation2 + $0x4] sm:$0x2] }
 0x133   : > { %478 = vst [vmem:[#allocation2 + $0x10] sm:$0x1] %v477_v40  ;;  %966 = vst [vmem:[#allocation2 + $0x24] sm:$0x1] %v965_v41  ;;  %v489_v45 = vsel %vm2330_vm3, %v2335_v12, %v488_v25  ;;  %v959_v46 = vsel %vm2330_vm3, %v2352_v22, %v958_v30  ;;  %v480_v47 = vsel %vm2330_vm3, %v2316_v58, %v479_v31  ;;  %v684_v29 = vld [vmem:[#allocation2 + $0x20] sm:$0x4] }
 0x134   : > { %487 = vst [vmem:[#allocation2 + $0x28] sm:$0x1] %v486_v42  ;;  %957 = vst [vmem:[#allocation2 + $0xc] sm:$0x1] %v956_v44  ;;  %v968_v49 = vsel %vm2330_vm3, %v2358_v27, %v967_v32  ;;  %v971_v50 = vsel %vm2330_vm3, %v2361_v28, %v970_v37  ;;  %v492_v51 = vsel %vm2330_vm3, %v2346_v19, %v491_v38  ;;  %v1240_v36 = vld [vmem:[#allocation2 + $0x4] sm:$0x8] }
 0x135   : > { %490 = vst [vmem:[#allocation2 + $0x30] sm:$0x1] %v489_v45  ;;  %960 = vst [vmem:[#allocation2 + $0x14] sm:$0x1] %v959_v46  ;;  %v962_v52 = vsel %vm2330_vm3, %v2355_v26, %v961_v39  ;;  %552 = vrot.lane.b32.xlu0 %v2319_v59, %s2121_s7  ;;  %v974_v53 = vsel %vm2330_vm3, %v2367_v33, %v973_v43  ;;  %vm720_vm3 = vsmask.f32 7946 }
 0x136   : > { %481 = vst [vmem:[#allocation2 + $0x18] sm:$0x1] %v480_v47  ;;  %969 = vst [vmem:[#allocation2 + $0x2c] sm:$0x1] %v968_v49  ;;  %696 = vrot.lane.b32.xlu1 %v2305_v48, %s2126_s12  ;;  %v2127_v48 = vmov 0.0  }
 0x137   : > { %972 = vst [vmem:[#allocation2 + $0x34] sm:$0x1] %v971_v50  ;;  %493 = vst [vmem:[#allocation2 + $0x38] sm:$0x1] %v492_v51  ;;  %1865 = vmatprep.subr.bf16.mxu1 %v2127_v48  ;;  %1883 = vmatprep.subr.bf16.mxu0 %v2127_v48  ;;  %v785_v37 = vld [vmem:[#allocation2 + $0x20] sm:$0x8] }
 0x138   : > { %963 = vst [vmem:[#allocation2 + $0x1c] sm:$0x1] %v962_v52  ;;  %975 = vst [vmem:[#allocation2 + $0x3c] sm:$0x1] %v974_v53  ;;  %1867 = vmatprep.mubr.msk.bf16.mxu1 %vm2128_vm4, %v2127_v48  ;;  %1885 = vmatprep.mubr.msk.bf16.mxu0 %vm2128_vm4, %v2127_v48  ;;  %v520_v8 = vld [vmem:[#allocation2] sm:$0x1] }
 0x139   : > { %1024 = vrot.lane.b32.xlu0 %v2338_v14, %s2121_s7  ;;  %vm2576_vm1 = vmand %vm669_vm5, %vm720_vm3  ;;  %v1144_v41 = vld [vmem:[#allocation2 + $0x4] sm:$0x4]  ;;  %v532_v50 = vld [vmem:[#allocation2 + $0x20] sm:$0x1]  ;;  %vm1339_vm5 = vcmask 130048  }
 0x13a   : > { %653 = vrot.lane.b32.xlu1 %v2319_v59, %s2120_s6  ;;  %v675_v53 = vld [vmem:[#allocation2 + $0x8] sm:$0x4] }
 0x13d   : > { %1216 = vrot.lane.b32.xlu0 %v2338_v14, %s2123_s27 }
 0x13e   : > { %754 = vrot.lane.b32.xlu1 %v2319_v59, %s2123_s27 }
 0x141   : > { %603 = vrot.lane.b32.xlu0 %v2319_v59, %s2122_s8 }
 0x142   : > { %1120 = vrot.lane.b32.xlu1 %v2338_v14, %s2120_s6 }
 0x145   : > { %805 = vrot.lane.b32.xlu0 %v2319_v59, %s2124_s15 }
 0x146   : > { %502 = vrot.lane.b32.xlu1 %v2319_v59, %s2125_s28 }
 0x149   : > { %647 = vrot.lane.b32.xlu0 %v2308_v54, %s2120_s6 }
 0x14a   : > { %704 = vrot.lane.b32.xlu1 %v2319_v59, %s2126_s12 }
 0x14d   : > { %1072 = vrot.lane.b32.xlu0 %v2338_v14, %s2122_s8 }
 0x14e   : > { %546 = vrot.lane.b32.xlu1 %v2308_v54, %s2121_s7 }
 0x151   : > { %1264 = vrot.lane.b32.xlu0 %v2338_v14, %s2124_s15 }
 0x152   : > { %748 = vrot.lane.b32.xlu1 %v2308_v54, %s2123_s27 }
 0x155   : > { %649 = vrot.lane.b32.xlu0 %v2313_v57, %s2120_s6 }
 0x156   : > { %976 = vrot.lane.b32.xlu1 %v2338_v14, %s2125_s28 }
 0x159   : > { %597 = vrot.lane.b32.xlu0 %v2308_v54, %s2122_s8 }
 0x15a   : > { %1168 = vrot.lane.b32.xlu1 %v2338_v14, %s2126_s12 }
 0x15d   : > { %799 = vrot.lane.b32.xlu0 %v2308_v54, %s2124_s15 }
 0x15e   : > { %548 = vrot.lane.b32.xlu1 %v2313_v57, %s2121_s7 }
 0x161   : > { %599 = vrot.lane.b32.xlu0 %v2313_v57, %s2122_s8 }
 0x162   : > { %750 = vrot.lane.b32.xlu1 %v2313_v57, %s2123_s27 }
 0x165   : > { %801 = vrot.lane.b32.xlu0 %v2313_v57, %s2124_s15 }
 0x166   : > { %496 = vrot.lane.b32.xlu1 %v2308_v54, %s2125_s28 }
 0x169   : > { %1032 = vrot.lane.b32.xlu0 %v2341_v15, %s2121_s7 }
 0x16a   : > { %698 = vrot.lane.b32.xlu1 %v2308_v54, %s2126_s12 }
 0x16d   : > { %1224 = vrot.lane.b32.xlu0 %v2341_v15, %s2123_s27 }
 0x16e   : > { %498 = vrot.lane.b32.xlu1 %v2313_v57, %s2125_s28 }
 0x171   : > { %655 = vrot.lane.b32.xlu0 %v2324_v0, %s2120_s6 }
 0x172   : > { %700 = vrot.lane.b32.xlu1 %v2313_v57, %s2126_s12  ;;  %v571_v57 = vld [vmem:[#allocation2] sm:$0x2] }
 0x175   : > { %1080 = vrot.lane.b32.xlu0 %v2341_v15, %s2122_s8 }
 0x176   : > { %1128 = vrot.lane.b32.xlu1 %v2341_v15, %s2120_s6 }
 0x179   : > { %1272 = vrot.lane.b32.xlu0 %v2341_v15, %s2124_s15 }
 0x17a   : > { %554 = vrot.lane.b32.xlu1 %v2324_v0, %s2121_s7 }
 0x17d   : > { %1026 = vrot.lane.b32.xlu0 %v2349_v21, %s2121_s7 }
 0x17e   : > { %756 = vrot.lane.b32.xlu1 %v2324_v0, %s2123_s27 }
 0x181   : > { %1218 = vrot.lane.b32.xlu0 %v2349_v21, %s2123_s27 }
 0x182   : > { %984 = vrot.lane.b32.xlu1 %v2341_v15, %s2125_s28 }
 0x185   : > { %657 = vrot.lane.b32.xlu0 %v2335_v12, %s2120_s6 }
 0x186   : > { %1176 = vrot.lane.b32.xlu1 %v2341_v15, %s2126_s12 }
 0x189   : > { %605 = vrot.lane.b32.xlu0 %v2324_v0, %s2122_s8 }
 0x18a   : > { %1122 = vrot.lane.b32.xlu1 %v2349_v21, %s2120_s6 }
 0x18d   : > { %807 = vrot.lane.b32.xlu0 %v2324_v0, %s2124_s15 }
 0x18e   : > { %556 = vrot.lane.b32.xlu1 %v2335_v12, %s2121_s7 }
 0x191   : > { %1028 = vrot.lane.b32.xlu0 %v2352_v22, %s2121_s7 }
 0x192   : > { %758 = vrot.lane.b32.xlu1 %v2335_v12, %s2123_s27 }
 0x195   : > { %1220 = vrot.lane.b32.xlu0 %v2352_v22, %s2123_s27 }
 0x196   : > { %504 = vrot.lane.b32.xlu1 %v2324_v0, %s2125_s28 }
 0x199   : > { %1074 = vrot.lane.b32.xlu0 %v2349_v21, %s2122_s8 }
 0x19a   : > { %706 = vrot.lane.b32.xlu1 %v2324_v0, %s2126_s12  ;;  %v773_v0 = vld [vmem:[#allocation2] sm:$0x8] }
 0x19b   : > { %v646_v59 = vpop.permute.xlu0 %645 }
 0x19c   : > { %v673_v60 = vsel %vm2527_vm9, %v646_v59, %v672_v55  ;;  %v545_v61 = vpop.permute.xlu1 %544 }
 0x19d   : > { %674 = vst [vmem:[#allocation2] sm:$0x4] %v673_v60  ;;  %v572_v62 = vsel %vm2534_vm10, %v545_v61, %v571_v57  ;;  %1266 = vrot.lane.b32.xlu0 %v2349_v21, %s2124_s15 }
 0x19e   : > { %573 = vst [vmem:[#allocation2] sm:$0x2] %v572_v62  ;;  %1124 = vrot.lane.b32.xlu1 %v2352_v22, %s2120_s6  ;;  %v574_v62 = vld [vmem:[#allocation2 + $0x8] sm:$0x2] }
 0x19f   : > { %v596_v1 = vpop.permute.xlu0 %595 }
 0x1a0   : > { %v747_v2 = vpop.permute.xlu1 %746 }
 0x1a1   : > { %v774_v3 = vsel %vm2547_vm13, %v747_v2, %v773_v0  ;;  %651 = vrot.lane.b32.xlu0 %v2316_v58, %s2120_s6 }
 0x1a2   : > { %775 = vst [vmem:[#allocation2] sm:$0x8] %v774_v3  ;;  %978 = vrot.lane.b32.xlu1 %v2349_v21, %s2125_s28 }
 0x1a3   : > { %v798_v6 = vpop.permute.xlu0 %797 }
 0x1a4   : > { %v495_v7 = vpop.permute.xlu1 %494  ;;  %v722_v17 = vld [vmem:[#allocation2] sm:$0x4] }
 0x1a5   : > { %v621_v9 = vld [vmem:[#allocation2] sm:$0x2]  ;;  %v521_v10 = vsel %vm2558_vm0, %v495_v7, %v520_v8  ;;  %607 = vrot.lane.b32.xlu0 %v2335_v12, %s2122_s8  ;;  %v776_v7 = vld [vmem:[#allocation2 + $0x8] sm:$0x8] }
 0x1a6   : > { %v622_v13 = vsel %vm2563_vm2, %v596_v1, %v621_v9  ;;  %522 = vst [vmem:[#allocation2] sm:$0x1] %v521_v10  ;;  %1170 = vrot.lane.b32.xlu1 %v2349_v21, %s2126_s12 }
 0x1a7   : > { %623 = vst [vmem:[#allocation2] sm:$0x2] %v622_v13  ;;  %v553_v16 = vpop.permute.xlu0 %552  ;;  %v678_v13 = vld [vmem:[#allocation2 + $0x10] sm:$0x4] }
 0x1a8   : > { %v697_v18 = vpop.permute.xlu1 %696  ;;  %v584_v20 = vsel %vm2534_vm10, %v553_v16, %v583_v11 }
 0x1a9   : > { %v823_v23 = vld [vmem:[#allocation2] sm:$0x8]  ;;  %v723_v21 = vsel %vm2576_vm1, %v697_v18, %v722_v17  ;;  %585 = vst [vmem:[#allocation2 + $0x20] sm:$0x2] %v584_v20  ;;  %809 = vrot.lane.b32.xlu0 %v2335_v12, %s2124_s15  ;;  %v1000_v17 = vld [vmem:[#allocation2 + $0x4] sm:$0x1] }
 0x1aa   : > { %v824_v25 = vsel %vm2581_vm7, %v798_v6, %v823_v23  ;;  %724 = vst [vmem:[#allocation2] sm:$0x4] %v723_v21  ;;  %550 = vrot.lane.b32.xlu1 %v2316_v58, %s2121_s7 }
 0x1ab   : > { %825 = vst [vmem:[#allocation2] sm:$0x8] %v824_v25  ;;  %v1025_v30 = vpop.permute.xlu0 %1024 }
 0x1ac   : > { %v654_v31 = vpop.permute.xlu1 %653  ;;  %v1049_v32 = vsel %vm2534_vm10, %v1025_v30, %v1048_v24 }
 0x1ad   : > { %v685_v34 = vsel %vm2527_vm9, %v654_v31, %v684_v29  ;;  %1050 = vst [vmem:[#allocation2 + $0x4] sm:$0x2] %v1049_v32  ;;  %1076 = vrot.lane.b32.xlu0 %v2352_v22, %s2122_s8  ;;  %v577_v31 = vld [vmem:[#allocation2 + $0x10] sm:$0x2] }
 0x1ae   : > { %686 = vst [vmem:[#allocation2 + $0x20] sm:$0x4] %v685_v34  ;;  %752 = vrot.lane.b32.xlu1 %v2316_v58, %s2123_s27 }
 0x1af   : > { %v1217_v38 = vpop.permute.xlu0 %1216 }
 0x1b0   : > { %v755_v39 = vpop.permute.xlu1 %754  ;;  %v1241_v35 = vsel %vm2547_vm13, %v1217_v38, %v1240_v36  ;;  %v633_v42 = vld [vmem:[#allocation2 + $0x20] sm:$0x2] }
 0x1b1   : > { %v786_v40 = vsel %vm2547_vm13, %v755_v39, %v785_v37  ;;  %1242 = vst [vmem:[#allocation2 + $0x4] sm:$0x8] %v1241_v35  ;;  %1268 = vrot.lane.b32.xlu0 %v2352_v22, %s2124_s15  ;;  %v779_v39 = vld [vmem:[#allocation2 + $0x10] sm:$0x8] }
 0x1b2   : > { %787 = vst [vmem:[#allocation2 + $0x20] sm:$0x8] %v786_v40  ;;  %506 = vrot.lane.b32.xlu1 %v2335_v12, %s2125_s28 }
 0x1b3   : > { %v604_v43 = vpop.permute.xlu0 %603 }
 0x1b4   : > { %v1121_v44 = vpop.permute.xlu1 %1120  ;;  %v634_v45 = vsel %vm2563_vm2, %v604_v43, %v633_v42  ;;  %v1096_v0 = vld [vmem:[#allocation2 + $0x4] sm:$0x2]  ;;  %v523_v43 = vld [vmem:[#allocation2 + $0x8] sm:$0x1] }
 0x1b5   : > { %v1145_v46 = vsel %vm2527_vm9, %v1121_v44, %v1144_v41  ;;  %635 = vst [vmem:[#allocation2 + $0x20] sm:$0x2] %v634_v45  ;;  %601 = vrot.lane.b32.xlu0 %v2316_v58, %s2122_s8  ;;  %v734_v57 = vld [vmem:[#allocation2 + $0x20] sm:$0x4] }
 0x1b6   : > { %1146 = vst [vmem:[#allocation2 + $0x4] sm:$0x4] %v1145_v46  ;;  %708 = vrot.lane.b32.xlu1 %v2335_v12, %s2126_s12 }
 0x1b7   : > { %v806_v47 = vpop.permute.xlu0 %805 }
 0x1b8   : > { %v503_v49 = vpop.permute.xlu1 %502 }
 0x1b9   : > { %v533_v51 = vsel %vm2558_vm0, %v503_v49, %v532_v50  ;;  %v835_v52 = vld [vmem:[#allocation2 + $0x20] sm:$0x8]  ;;  %803 = vrot.lane.b32.xlu0 %v2316_v58, %s2124_s15 }
 0x1ba   : > { %534 = vst [vmem:[#allocation2 + $0x20] sm:$0x1] %v533_v51  ;;  %v836_v55 = vsel %vm2581_vm7, %v806_v47, %v835_v52  ;;  %980 = vrot.lane.b32.xlu1 %v2352_v22, %s2125_s28  ;;  %v1060_v47 = vld [vmem:[#allocation2 + $0x24] sm:$0x2] }
 0x1bb   : > { %837 = vst [vmem:[#allocation2 + $0x20] sm:$0x8] %v836_v55  ;;  %v648_v12 = vpop.permute.xlu0 %647 }
 0x1bc   : > { %v705_v59 = vpop.permute.xlu1 %704  ;;  %v676_v60 = vsel %vm2527_vm9, %v648_v12, %v675_v53  ;;  %v1252_v12 = vld [vmem:[#allocation2 + $0x24] sm:$0x8] }
 0x1bd   : > { %v735_v61 = vsel %vm2576_vm1, %v705_v59, %v734_v57  ;;  %677 = vst [vmem:[#allocation2 + $0x8] sm:$0x4] %v676_v60  ;;  %1034 = vrot.lane.b32.xlu0 %v2358_v27, %s2121_s7 }
 0x1be   : > { %736 = vst [vmem:[#allocation2 + $0x20] sm:$0x4] %v735_v61  ;;  %1172 = vrot.lane.b32.xlu1 %v2352_v22, %s2126_s12  ;;  %v1288_v22 = vld [vmem:[#allocation2 + $0x4] sm:$0x8] }
 0x1bf   : > { %v1073_v1 = vpop.permute.xlu0 %1072 }
 0x1c0   : > { %v547_v2 = vpop.permute.xlu1 %546  ;;  %v1097_v3 = vsel %vm2563_vm2, %v1073_v1, %v1096_v0  ;;  %v687_v1 = vld [vmem:[#allocation2 + $0x28] sm:$0x4] }
 0x1c1   : > { %v575_v6 = vsel %vm2534_vm10, %v547_v2, %v574_v62  ;;  %1098 = vst [vmem:[#allocation2 + $0x4] sm:$0x2] %v1097_v3  ;;  %1226 = vrot.lane.b32.xlu0 %v2358_v27, %s2123_s27  ;;  %v526_v62 = vld [vmem:[#allocation2 + $0x10] sm:$0x1] }
 0x1c2   : > { %576 = vst [vmem:[#allocation2 + $0x8] sm:$0x2] %v575_v6  ;;  %500 = vrot.lane.b32.xlu1 %v2316_v58, %s2125_s28 }
 0x1c3   : > { %v1265_v8 = vpop.permute.xlu0 %1264 }
 0x1c4   : > { %v749_v9 = vpop.permute.xlu1 %748  ;;  %v1289_v10 = vsel %vm2581_vm7, %v1265_v8, %v1288_v22  ;;  %v725_v51 = vld [vmem:[#allocation2 + $0x8] sm:$0x4]  ;;  %v1156_v8 = vld [vmem:[#allocation2 + $0x24] sm:$0x4] }
 0x1c5   : > { %v777_v11 = vsel %vm2547_vm13, %v749_v9, %v776_v7  ;;  %1290 = vst [vmem:[#allocation2 + $0x4] sm:$0x8] %v1289_v10  ;;  %1036 = vrot.lane.b32.xlu0 %v2361_v28, %s2121_s7 }
 0x1c6   : > { %778 = vst [vmem:[#allocation2 + $0x8] sm:$0x8] %v777_v11  ;;  %702 = vrot.lane.b32.xlu1 %v2316_v58, %s2126_s12  ;;  %v1192_v58 = vld [vmem:[#allocation2 + $0x4] sm:$0x4] }
 0x1c7   : > { %v650_v16 = vpop.permute.xlu0 %649 }
 0x1c8   : > { %v977_v18 = vpop.permute.xlu1 %976  ;;  %v679_v20 = vsel %vm2527_vm9, %v650_v16, %v678_v13 }
 0x1c9   : > { %v1001_v23 = vsel %vm2558_vm0, %v977_v18, %v1000_v17  ;;  %680 = vst [vmem:[#allocation2 + $0x10] sm:$0x4] %v679_v20  ;;  %1228 = vrot.lane.b32.xlu0 %v2361_v28, %s2123_s27  ;;  %v624_v21 = vld [vmem:[#allocation2 + $0x8] sm:$0x2] }
 0x1ca   : > { %1002 = vst [vmem:[#allocation2 + $0x4] sm:$0x1] %v1001_v23  ;;  %1130 = vrot.lane.b32.xlu1 %v2358_v27, %s2120_s6  ;;  %v586_v17 = vld [vmem:[#allocation2 + $0x28] sm:$0x2] }
 0x1cb   : > { %v598_v24 = vpop.permute.xlu0 %597 }
 0x1cc   : > { %v1169_v25 = vpop.permute.xlu1 %1168  ;;  %v625_v29 = vsel %vm2563_vm2, %v598_v24, %v624_v21 }
 0x1cd   : > { %v1193_v30 = vsel %vm2576_vm1, %v1169_v25, %v1192_v58  ;;  %626 = vst [vmem:[#allocation2 + $0x8] sm:$0x2] %v625_v29  ;;  %1082 = vrot.lane.b32.xlu0 %v2358_v27, %s2122_s8  ;;  %v826_v32 = vld [vmem:[#allocation2 + $0x8] sm:$0x8]  ;;  %v1051_v58 = vld [vmem:[#allocation2 + $0xc] sm:$0x2] }
 0x1ce   : > { %1194 = vst [vmem:[#allocation2 + $0x4] sm:$0x4] %v1193_v30  ;;  %1132 = vrot.lane.b32.xlu1 %v2361_v28, %s2120_s6 }
 0x1cf   : > { %v800_v34 = vpop.permute.xlu0 %799 }
 0x1d0   : > { %v827_v36 = vsel %vm2581_vm7, %v800_v34, %v826_v32  ;;  %v549_v37 = vpop.permute.xlu1 %548  ;;  %v728_v6 = vld [vmem:[#allocation2 + $0x10] sm:$0x4]  ;;  %v1243_v32 = vld [vmem:[#allocation2 + $0xc] sm:$0x8] }
 0x1d1   : > { %828 = vst [vmem:[#allocation2 + $0x8] sm:$0x8] %v827_v36  ;;  %v578_v38 = vsel %vm2534_vm10, %v549_v37, %v577_v31  ;;  %1274 = vrot.lane.b32.xlu0 %v2358_v27, %s2124_s15  ;;  %v1012_v37 = vld [vmem:[#allocation2 + $0x24] sm:$0x1] }
 0x1d2   : > { %579 = vst [vmem:[#allocation2 + $0x10] sm:$0x2] %v578_v38  ;;  %986 = vrot.lane.b32.xlu1 %v2358_v27, %s2125_s28 }
 0x1d3   : > { %v600_v35 = vpop.permute.xlu0 %599 }
 0x1d4   : > { %v751_v40 = vpop.permute.xlu1 %750 }
 0x1d5   : > { %v780_v41 = vsel %vm2547_vm13, %v751_v40, %v779_v39  ;;  %659 = vrot.lane.b32.xlu0 %v2346_v19, %s2120_s6 }
 0x1d6   : > { %781 = vst [vmem:[#allocation2 + $0x10] sm:$0x8] %v780_v41  ;;  %1178 = vrot.lane.b32.xlu1 %v2358_v27, %s2126_s12 }
 0x1d7   : > { %v802_v42 = vpop.permute.xlu0 %801 }
 0x1d8   : > { %v497_v44 = vpop.permute.xlu1 %496 }
 0x1d9   : > { %v627_v45 = vld [vmem:[#allocation2 + $0x10] sm:$0x2]  ;;  %v524_v46 = vsel %vm2558_vm0, %v497_v44, %v523_v43  ;;  %1030 = vrot.lane.b32.xlu0 %v2355_v26, %s2121_s7  ;;  %v1147_v44 = vld [vmem:[#allocation2 + $0xc] sm:$0x4] }
 0x1da   : > { %v628_v49 = vsel %vm2563_vm2, %v600_v35, %v627_v45  ;;  %525 = vst [vmem:[#allocation2 + $0x8] sm:$0x1] %v524_v46  ;;  %558 = vrot.lane.b32.xlu1 %v2346_v19, %s2121_s7  ;;  %v690_v35 = vld [vmem:[#allocation2 + $0x30] sm:$0x4] }
 0x1db   : > { %629 = vst [vmem:[#allocation2 + $0x10] sm:$0x2] %v628_v49  ;;  %v1033_v27 = vpop.permute.xlu0 %1032 }
 0x1dc   : > { %v1061_v50 = vsel %vm2534_vm10, %v1033_v27, %v1060_v47  ;;  %v699_v52 = vpop.permute.xlu1 %698 }
 0x1dd   : > { %v829_v53 = vld [vmem:[#allocation2 + $0x10] sm:$0x8]  ;;  %1062 = vst [vmem:[#allocation2 + $0x24] sm:$0x2] %v1061_v50  ;;  %v726_v55 = vsel %vm2576_vm1, %v699_v52, %v725_v51  ;;  %1222 = vrot.lane.b32.xlu0 %v2355_v26, %s2123_s27  ;;  %v589_v50 = vld [vmem:[#allocation2 + $0x30] sm:$0x2] }
 0x1de   : > { %v830_v57 = vsel %vm2581_vm7, %v802_v42, %v829_v53  ;;  %727 = vst [vmem:[#allocation2 + $0x8] sm:$0x4] %v726_v55  ;;  %760 = vrot.lane.b32.xlu1 %v2346_v19, %s2123_s27 }
 0x1df   : > { %831 = vst [vmem:[#allocation2 + $0x10] sm:$0x8] %v830_v57  ;;  %v1225_v59 = vpop.permute.xlu0 %1224 }
 0x1e0   : > { %v1253_v60 = vsel %vm2547_vm13, %v1225_v59, %v1252_v12  ;;  %v499_v61 = vpop.permute.xlu1 %498  ;;  %v1054_v59 = vld [vmem:[#allocation2 + $0x14] sm:$0x2] }
 0x1e1   : > { %1254 = vst [vmem:[#allocation2 + $0x24] sm:$0x8] %v1253_v60  ;;  %v527_v0 = vsel %vm2558_vm0, %v499_v61, %v526_v62  ;;  %1084 = vrot.lane.b32.xlu0 %v2361_v28, %s2122_s8  ;;  %v791_v60 = vld [vmem:[#allocation2 + $0x30] sm:$0x8] }
 0x1e2   : > { %528 = vst [vmem:[#allocation2 + $0x10] sm:$0x1] %v527_v0  ;;  %1126 = vrot.lane.b32.xlu1 %v2355_v26, %s2120_s6 }
 0x1e3   : > { %v656_v2 = vpop.permute.xlu0 %655 }
 0x1e4   : > { %v688_v3 = vsel %vm2527_vm9, %v656_v2, %v687_v1  ;;  %v701_v7 = vpop.permute.xlu1 %700  ;;  %v1108_v9 = vld [vmem:[#allocation2 + $0x24] sm:$0x2] }
 0x1e5   : > { %689 = vst [vmem:[#allocation2 + $0x28] sm:$0x4] %v688_v3  ;;  %v729_v22 = vsel %vm2576_vm1, %v701_v7, %v728_v6  ;;  %1276 = vrot.lane.b32.xlu0 %v2361_v28, %s2124_s15  ;;  %v1976_v1 = vld [vmem:[#allocation2] sm:$0xff]   ;;  %v1246_v3 = vld [vmem:[#allocation2 + $0x14] sm:$0x8] }
 0x1e6   : > { %730 = vst [vmem:[#allocation2 + $0x10] sm:$0x4] %v729_v22  ;;  %988 = vrot.lane.b32.xlu1 %v2361_v28, %s2125_s28  ;;  %v535_v7 = vld [vmem:[#allocation2 + $0x28] sm:$0x1] }
 0x1e7   : > { %v1081_v10 = vpop.permute.xlu0 %1080 }
 0x1e8   : > { %v1109_v11 = vsel %vm2563_vm2, %v1081_v10, %v1108_v9  ;;  %v1129_v13 = vpop.permute.xlu1 %1128  ;;  %v1300_v18 = vld [vmem:[#allocation2 + $0x24] sm:$0x8] }
 0x1e9   : > { %1110 = vst [vmem:[#allocation2 + $0x24] sm:$0x2] %v1109_v11  ;;  %v1157_v16 = vsel %vm2527_vm9, %v1129_v13, %v1156_v8  ;;  %609 = vrot.lane.b32.xlu0 %v2346_v19, %s2122_s8 }
 0x1ea   : > { %1158 = vst [vmem:[#allocation2 + $0x24] sm:$0x4] %v1157_v16  ;;  %1180 = vrot.lane.b32.xlu1 %v2361_v28, %s2126_s12  ;;  %v788_v28 = vld [vmem:[#allocation2 + $0x28] sm:$0x8] }
 0x1eb   : > { %v1273_v20 = vpop.permute.xlu0 %1272 }
 0x1ec   : > { %v1301_v23 = vsel %vm2581_vm7, %v1273_v20, %v1300_v18  ;;  %v555_v21 = vpop.permute.xlu1 %554  ;;  %v737_v11 = vld [vmem:[#allocation2 + $0x28] sm:$0x4] }
 0x1ed   : > { %1302 = vst [vmem:[#allocation2 + $0x24] sm:$0x8] %v1301_v23  ;;  %v587_v24 = vsel %vm2534_vm10, %v555_v21, %v586_v17  ;;  %811 = vrot.lane.b32.xlu0 %v2346_v19, %s2124_s15  ;;  %v1150_v17 = vld [vmem:[#allocation2 + $0x14] sm:$0x4] }
 0x1ee   : > { %588 = vst [vmem:[#allocation2 + $0x28] sm:$0x2] %v587_v24  ;;  %508 = vrot.lane.b32.xlu1 %v2346_v19, %s2125_s28 }
 0x1ef   : > { %v1027_v25 = vpop.permute.xlu0 %1026 }
 0x1f0   : > { %v1052_v29 = vsel %vm2534_vm10, %v1027_v25, %v1051_v58  ;;  %v757_v30 = vpop.permute.xlu1 %756  ;;  %v681_v58 = vld [vmem:[#allocation2 + $0x18] sm:$0x4] }
 0x1f1   : > { %1053 = vst [vmem:[#allocation2 + $0xc] sm:$0x2] %v1052_v29  ;;  %v789_v31 = vsel %vm2547_vm13, %v757_v30, %v788_v28  ;;  %1078 = vrot.lane.b32.xlu0 %v2355_v26, %s2122_s8  ;;  %v1003_v29 = vld [vmem:[#allocation2 + $0xc] sm:$0x1] }
 0x1f2   : > { %790 = vst [vmem:[#allocation2 + $0x28] sm:$0x8] %v789_v31  ;;  %710 = vrot.lane.b32.xlu1 %v2346_v19, %s2126_s12  ;;  %v1204_v19 = vld [vmem:[#allocation2 + $0x24] sm:$0x4] }
 0x1f3   : > { %v1219_v34 = vpop.permute.xlu0 %1218 }
 0x1f4   : > { %v1244_v36 = vsel %vm2547_vm13, %v1219_v34, %v1243_v32  ;;  %v985_v38 = vpop.permute.xlu1 %984 }
 0x1f5   : > { %1245 = vst [vmem:[#allocation2 + $0xc] sm:$0x8] %v1244_v36  ;;  %v1013_v39 = vsel %vm2558_vm0, %v985_v38, %v1012_v37  ;;  %1038 = vrot.lane.b32.xlu0 %v2367_v33, %s2121_s7  ;;  %v636_v45 = vld [vmem:[#allocation2 + $0x28] sm:$0x2]  ;;  %s2931_s7 = scalar_lea.hbm %s2973_s5, %s1853_s26 }
 0x1f6   : > { %1014 = vst [vmem:[#allocation2 + $0x24] sm:$0x1] %v1013_v39  ;;  %982 = vrot.lane.b32.xlu1 %v2355_v26, %s2125_s28 }
 0x1f7   : > { %v658_v40 = vpop.permute.xlu0 %657 }
 0x1f8   : > { %v1177_v41 = vpop.permute.xlu1 %1176  ;;  %v691_v42 = vsel %vm2527_vm9, %v658_v40, %v690_v35  ;;  %v1099_v9 = vld [vmem:[#allocation2 + $0xc] sm:$0x2]  ;;  %v580_v35 = vld [vmem:[#allocation2 + $0x18] sm:$0x2] }
 0x1f9   : > { %v1205_v43 = vsel %vm2576_vm1, %v1177_v41, %v1204_v19  ;;  %692 = vst [vmem:[#allocation2 + $0x30] sm:$0x4] %v691_v42  ;;  %1230 = vrot.lane.b32.xlu0 %v2367_v33, %s2123_s27  ;;  %v838_v51 = vld [vmem:[#allocation2 + $0x28] sm:$0x8]  ;;  %s2043_s27 = scalar_lea.vmem %s1739_s10, 16 }
 0x1fa   : > { %1206 = vst [vmem:[#allocation2 + $0x24] sm:$0x4] %v1205_v43  ;;  %1134 = vrot.lane.b32.xlu1 %v2367_v33, %s2120_s6  ;;  %p2044_p3 = scmp.ne.s32.totalorder %s1739_s10, %s2043_s27 }
 0x1fb   : > { %v606_v46 = vpop.permute.xlu0 %605 }
 0x1fc   : > { %v1123_v47 = vpop.permute.xlu1 %1122  ;;  %v637_v49 = vsel %vm2563_vm2, %v606_v46, %v636_v45  ;;  %v1291_v18 = vld [vmem:[#allocation2 + $0xc] sm:$0x8]  ;;  %p2045_p7 = pnand %p2044_p3, %p3007_p11 }
 0x1fd   : > { %v1148_v27 = vsel %vm2527_vm9, %v1123_v47, %v1147_v44  ;;  %638 = vst [vmem:[#allocation2 + $0x28] sm:$0x2] %v637_v49  ;;  %1086 = vrot.lane.b32.xlu0 %v2367_v33, %s2122_s8  ;;  %v782_v44 = vld [vmem:[#allocation2 + $0x18] sm:$0x8]  ;;  %s1726_s8 = scalar_lea.sflag [#allocation5], %s2284_s16 }
 0x1fe   : > { %1149 = vst [vmem:[#allocation2 + $0xc] sm:$0x4] %v1148_v27  ;;  %990 = vrot.lane.b32.xlu1 %v2367_v33, %s2125_s28  ;;  %p2046_p9 = pneg %p2045_p7 }
 0x1ff   : > { %v808_v52 = vpop.permute.xlu0 %807 }
 0x200   : > { %v839_v53 = vsel %vm2581_vm7, %v808_v52, %v838_v51  ;;  %v557_v55 = vpop.permute.xlu1 %556 }
 0x201   : > { %840 = vst [vmem:[#allocation2 + $0x28] sm:$0x8] %v839_v53  ;;  %v590_v12 = vsel %vm2534_vm10, %v557_v55, %v589_v50  ;;  %1278 = vrot.lane.b32.xlu0 %v2367_v33, %s2124_s15  ;;  %v1975_v57 = vld [vmem:[#allocation2 + $0x20] sm:$0xff]   ;;  %v538_v55 = vld [vmem:[#allocation2 + $0x30] sm:$0x1] }
 0x202   : > { %591 = vst [vmem:[#allocation2 + $0x30] sm:$0x2] %v590_v12  ;;  %1182 = vrot.lane.b32.xlu1 %v2367_v33, %s2126_s12  ;;  %1866 = vmatpush3.bf16.msra.mxu1 %v1975_v57 }
 0x203   : > { %v1029_v61 = vpop.permute.xlu0 %1028  ;;  %1871 = vmatprep.subr.bf16.mxu1 %v2127_v48 }
 0x204   : > { %v1055_v62 = vsel %vm2534_vm10, %v1029_v61, %v1054_v59  ;;  %v759_v0 = vpop.permute.xlu1 %758  ;;  %v740_v61 = vld [vmem:[#allocation2 + $0x30] sm:$0x4] }
 0x205   : > { %1056 = vst [vmem:[#allocation2 + $0x14] sm:$0x2] %v1055_v62  ;;  %v792_v2 = vsel %vm2547_vm13, %v759_v0, %v791_v60  ;;  %1270 = vrot.lane.b32.xlu0 %v2355_v26, %s2124_s15  ;;  %1868 = vmatmul.mubr.msk.bf16.vlgmr.msra.gmra.mxu1 %vm1339_vm5, %v1976_v1  ;;  %v1195_v37 = vld [vmem:[#allocation2 + $0xc] sm:$0x4]  ;;  %s2047_s15 = sshll.u32 %s2131_s22, 4  ;;  %s2048_s15 = int_to_ptr.vmem [resolvable:$false] %s2047_s15 }
 0x206   : > { %793 = vst [vmem:[#allocation2 + $0x30] sm:$0x8] %v792_v2  ;;  %1174 = vrot.lane.b32.xlu1 %v2355_v26, %s2126_s12  ;;  %1873 = vmatprep.mubr.msk.bf16.mxu1 %vm2128_vm4, %v2127_v48  ;;  %s2049_s28 = scalar_lea.vmem %s2048_s15, 32  ;;  %p2050_p10 = scmp.lt.s32.totalorder %s1739_s10, %s2048_s15 }
 0x207   : > { %v1221_v33 = vpop.permute.xlu0 %1220  ;;  %p2051_p12 = scmp.lt.s32.totalorder %s2049_s28, %s2043_s27 }
 0x208   : > { %v1247_v6 = vsel %vm2547_vm13, %v1221_v33, %v1246_v3  ;;  %v505_v22 = vpop.permute.xlu1 %504  ;;  %v1006_v33 = vld [vmem:[#allocation2 + $0x14] sm:$0x1] }
 0x209   : > { %1248 = vst [vmem:[#allocation2 + $0x14] sm:$0x8] %v1247_v6  ;;  %v536_v8 = vsel %vm2558_vm0, %v505_v22, %v535_v7  ;;  %v639_v34 = vld [vmem:[#allocation2 + $0x30] sm:$0x2]  ;;  %v1063_v22 = vld [vmem:[#allocation2 + $0x2c] sm:$0x2]  ;;  %p2052_p13 = por %p2051_p12, %p2050_p10 }
 0x20a   : > { %537 = vst [vmem:[#allocation2 + $0x28] sm:$0x1] %v536_v8 }
 0x20b   : > { %v1075_v10 = vpop.permute.xlu0 %1074  ;;  %p2053_p0 = pnand %p2052_p13, %p2046_p9 }
 0x20c   : > { %v1100_v26 = vsel %vm2563_vm2, %v1075_v10, %v1099_v9  ;;  %v707_v13 = vpop.permute.xlu1 %706  ;;  %v1102_v45 = vld [vmem:[#allocation2 + $0x14] sm:$0x2] }
 0x20d   : > { %1101 = vst [vmem:[#allocation2 + $0xc] sm:$0x2] %v1100_v26  ;;  %v738_v16 = vsel %vm2576_vm1, %v707_v13, %v737_v11  ;;  %v841_v19 = vld [vmem:[#allocation2 + $0x30] sm:$0x8]  ;;  %v1255_v13 = vld [vmem:[#allocation2 + $0x2c] sm:$0x8] }
 0x20e   : > { %739 = vst [vmem:[#allocation2 + $0x28] sm:$0x4] %v738_v16 }
 0x20f   : > { %v1267_v20 = vpop.permute.xlu0 %1266 }
 0x210   : > { %v1292_v23 = vsel %vm2581_vm7, %v1267_v20, %v1291_v18  ;;  %v1125_v21 = vpop.permute.xlu1 %1124  ;;  %v1294_v50 = vld [vmem:[#allocation2 + $0x14] sm:$0x8]  ;;  %v529_v18 = vld [vmem:[#allocation2 + $0x18] sm:$0x1] }
 0x211   : > { %1293 = vst [vmem:[#allocation2 + $0xc] sm:$0x8] %v1292_v23  ;;  %v1151_v24 = vsel %vm2527_vm9, %v1125_v21, %v1150_v17  ;;  %v1066_v21 = vld [vmem:[#allocation2 + $0x34] sm:$0x2] }
 0x212   : > { %1152 = vst [vmem:[#allocation2 + $0x14] sm:$0x4] %v1151_v24 }
 0x213   : > { %v652_v28 = vpop.permute.xlu0 %651 }
 0x214   : > { %v682_v25 = vsel %vm2527_vm9, %v652_v28, %v681_v58  ;;  %v979_v30 = vpop.permute.xlu1 %978 }
 0x215   : > { %683 = vst [vmem:[#allocation2 + $0x18] sm:$0x4] %v682_v25  ;;  %v1004_v31 = vsel %vm2558_vm0, %v979_v30, %v1003_v29  ;;  %v1258_v30 = vld [vmem:[#allocation2 + $0x34] sm:$0x8] }
 0x216   : > { %1005 = vst [vmem:[#allocation2 + $0xc] sm:$0x1] %v1004_v31  ;;  %v1159_v31 = vld [vmem:[#allocation2 + $0x2c] sm:$0x4] }
 0x217   : > { %v608_v32 = vpop.permute.xlu0 %607 }
 0x218   : > { %v640_v36 = vsel %vm2563_vm2, %v608_v32, %v639_v34  ;;  %v1171_v38 = vpop.permute.xlu1 %1170 }
 0x219   : > { %641 = vst [vmem:[#allocation2 + $0x30] sm:$0x2] %v640_v36  ;;  %v1196_v39 = vsel %vm2576_vm1, %v1171_v38, %v1195_v37  ;;  %v1198_v10 = vld [vmem:[#allocation2 + $0x14] sm:$0x4] }
 0x21a   : > { %1197 = vst [vmem:[#allocation2 + $0xc] sm:$0x4] %v1196_v39  ;;  %v1162_v38 = vld [vmem:[#allocation2 + $0x34] sm:$0x4] }
 0x21b   : > { %v810_v40 = vpop.permute.xlu0 %809 }
 0x21c   : > { %v842_v41 = vsel %vm2581_vm7, %v810_v40, %v841_v19  ;;  %v551_v42 = vpop.permute.xlu1 %550  ;;  %v731_v28 = vld [vmem:[#allocation2 + $0x18] sm:$0x4] }
 0x21d   : > { %843 = vst [vmem:[#allocation2 + $0x30] sm:$0x8] %v842_v41  ;;  %v581_v43 = vsel %vm2534_vm10, %v551_v42, %v580_v35 }
 0x21e   : > { %582 = vst [vmem:[#allocation2 + $0x18] sm:$0x2] %v581_v43 }
 0x21f   : > { %v1077_v46 = vpop.permute.xlu0 %1076 }
 0x220   : > { %v1103_v47 = vsel %vm2563_vm2, %v1077_v46, %v1102_v45  ;;  %v753_v49 = vpop.permute.xlu1 %752  ;;  %v1015_v45 = vld [vmem:[#allocation2 + $0x2c] sm:$0x1] }
 0x221   : > { %1104 = vst [vmem:[#allocation2 + $0x14] sm:$0x2] %v1103_v47  ;;  %v783_v27 = vsel %vm2547_vm13, %v753_v49, %v782_v44  ;;  %v693_v49 = vld [vmem:[#allocation2 + $0x38] sm:$0x4] }
 0x222   : > { %784 = vst [vmem:[#allocation2 + $0x18] sm:$0x8] %v783_v27 }
 0x223   : > { %v1269_v51 = vpop.permute.xlu0 %1268 }
 0x224   : > { %v1295_v52 = vsel %vm2581_vm7, %v1269_v51, %v1294_v50  ;;  %v507_v53 = vpop.permute.xlu1 %506 }
 0x225   : > { %1296 = vst [vmem:[#allocation2 + $0x14] sm:$0x8] %v1295_v52  ;;  %v539_v12 = vsel %vm2558_vm0, %v507_v53, %v538_v55  ;;  %v630_v59 = vld [vmem:[#allocation2 + $0x18] sm:$0x2]  ;;  %v1057_v55 = vld [vmem:[#allocation2 + $0x1c] sm:$0x2] }
 0x226   : > { %540 = vst [vmem:[#allocation2 + $0x30] sm:$0x1] %v539_v12  ;;  %v592_v12 = vld [vmem:[#allocation2 + $0x38] sm:$0x2] }
 0x227   : > { %v602_v57 = vpop.permute.xlu0 %601 }
 0x228   : > { %v631_v60 = vsel %vm2563_vm2, %v602_v57, %v630_v59  ;;  %v709_v62 = vpop.permute.xlu1 %708 }
 0x229   : > { %632 = vst [vmem:[#allocation2 + $0x18] sm:$0x2] %v631_v60  ;;  %v741_v0 = vsel %vm2576_vm1, %v709_v62, %v740_v61  ;;  %v832_v2 = vld [vmem:[#allocation2 + $0x18] sm:$0x8]  ;;  %v1249_v62 = vld [vmem:[#allocation2 + $0x1c] sm:$0x8] }
 0x22a   : > { %742 = vst [vmem:[#allocation2 + $0x30] sm:$0x4] %v741_v0  ;;  %v794_v0 = vld [vmem:[#allocation2 + $0x38] sm:$0x8] }
 0x22b   : > { %v804_v1 = vpop.permute.xlu0 %803 }
 0x22c   : > { %v833_v3 = vsel %vm2581_vm7, %v804_v1, %v832_v2  ;;  %v981_v6 = vpop.permute.xlu1 %980 }
 0x22d   : > { %834 = vst [vmem:[#allocation2 + $0x18] sm:$0x8] %v833_v3  ;;  %v1007_v7 = vsel %vm2558_vm0, %v981_v6, %v1006_v33 }
 0x22e   : > { %1008 = vst [vmem:[#allocation2 + $0x14] sm:$0x1] %v1007_v7  ;;  %v1153_v7 = vld [vmem:[#allocation2 + $0x1c] sm:$0x4] }
 0x22f   : > { %v1035_v8 = vpop.permute.xlu0 %1034 }
 0x230   : > { %v1064_v9 = vsel %vm2534_vm10, %v1035_v8, %v1063_v22  ;;  %v1173_v26 = vpop.permute.xlu1 %1172 }
 0x231   : > { %1065 = vst [vmem:[#allocation2 + $0x2c] sm:$0x2] %v1064_v9  ;;  %v1199_v11 = vsel %vm2576_vm1, %v1173_v26, %v1198_v10  ;;  %v1978_v26 = vld [vmem:[#allocation2 + $0x8] sm:$0xff]  }
 0x232   : > { %1200 = vst [vmem:[#allocation2 + $0x14] sm:$0x4] %v1199_v11 }
 0x233   : > { %v1227_v16 = vpop.permute.xlu0 %1226 }
 0x234   : > { %v1256_v17 = vsel %vm2547_vm13, %v1227_v16, %v1255_v13  ;;  %v501_v20 = vpop.permute.xlu1 %500 }
 0x235   : > { %1257 = vst [vmem:[#allocation2 + $0x2c] sm:$0x8] %v1256_v17  ;;  %v530_v23 = vsel %vm2558_vm0, %v501_v20, %v529_v18  ;;  %v1018_v18 = vld [vmem:[#allocation2 + $0x34] sm:$0x1] }
 0x236   : > { %531 = vst [vmem:[#allocation2 + $0x18] sm:$0x1] %v530_v23 }
 0x237   : > { %v1037_v24 = vpop.permute.xlu0 %1036 }
 0x238   : > { %v1067_v58 = vsel %vm2534_vm10, %v1037_v24, %v1066_v21  ;;  %v703_v25 = vpop.permute.xlu1 %702  ;;  %v1111_v39 = vld [vmem:[#allocation2 + $0x2c] sm:$0x2] }
 0x239   : > { %1068 = vst [vmem:[#allocation2 + $0x34] sm:$0x2] %v1067_v58  ;;  %v732_v29 = vsel %vm2576_vm1, %v703_v25, %v731_v28 }
 0x23a   : > { %733 = vst [vmem:[#allocation2 + $0x18] sm:$0x4] %v732_v29 }
 0x23b   : > { %v1229_v32 = vpop.permute.xlu0 %1228 }
 0x23c   : > { %v1259_v34 = vsel %vm2547_vm13, %v1229_v32, %v1258_v30  ;;  %v1131_v36 = vpop.permute.xlu1 %1130  ;;  %v1303_v42 = vld [vmem:[#allocation2 + $0x2c] sm:$0x8] }
 0x23d   : > { %1260 = vst [vmem:[#allocation2 + $0x34] sm:$0x8] %v1259_v34  ;;  %v1160_v37 = vsel %vm2527_vm9, %v1131_v36, %v1159_v31  ;;  %v541_v34 = vld [vmem:[#allocation2 + $0x38] sm:$0x1] }
 0x23e   : > { %1161 = vst [vmem:[#allocation2 + $0x2c] sm:$0x4] %v1160_v37 }
 0x23f   : > { %v1083_v35 = vpop.permute.xlu0 %1082 }
 0x240   : > { %v1112_v40 = vsel %vm2563_vm2, %v1083_v35, %v1111_v39  ;;  %v1133_v19 = vpop.permute.xlu1 %1132  ;;  %v1114_v22 = vld [vmem:[#allocation2 + $0x34] sm:$0x2] }
 0x241   : > { %1113 = vst [vmem:[#allocation2 + $0x2c] sm:$0x2] %v1112_v40  ;;  %v1163_v41 = vsel %vm2527_vm9, %v1133_v19, %v1162_v38 }
 0x242   : > { %1164 = vst [vmem:[#allocation2 + $0x34] sm:$0x4] %v1163_v41  ;;  %v1069_v41 = vld [vmem:[#allocation2 + $0x3c] sm:$0x2] }
 0x243   : > { %v1275_v43 = vpop.permute.xlu0 %1274 }
 0x244   : > { %v1304_v44 = vsel %vm2581_vm7, %v1275_v43, %v1303_v42  ;;  %v987_v46 = vpop.permute.xlu1 %986  ;;  %v1306_v13 = vld [vmem:[#allocation2 + $0x34] sm:$0x8] }
 0x245   : > { %1305 = vst [vmem:[#allocation2 + $0x2c] sm:$0x8] %v1304_v44  ;;  %v1016_v47 = vsel %vm2558_vm0, %v987_v46, %v1015_v45  ;;  %v1207_v50 = vld [vmem:[#allocation2 + $0x2c] sm:$0x4]  ;;  %v1009_v45 = vld [vmem:[#allocation2 + $0x1c] sm:$0x1] }
 0x246   : > { %1017 = vst [vmem:[#allocation2 + $0x2c] sm:$0x1] %v1016_v47  ;;  %v1980_v47 = vld [vmem:[#allocation2 + $0x10] sm:$0xff]  }
 0x247   : > { %v660_v27 = vpop.permute.xlu0 %659 }
 0x248   : > { %v1179_v51 = vpop.permute.xlu1 %1178  ;;  %v694_v52 = vsel %vm2527_vm9, %v660_v27, %v693_v49  ;;  %v1261_v27 = vld [vmem:[#allocation2 + $0x3c] sm:$0x8] }
 0x249   : > { %v1208_v53 = vsel %vm2576_vm1, %v1179_v51, %v1207_v50  ;;  %695 = vst [vmem:[#allocation2 + $0x38] sm:$0x4] %v694_v52  ;;  %v1210_v28 = vld [vmem:[#allocation2 + $0x34] sm:$0x4]  ;;  %v1165_v50 = vld [vmem:[#allocation2 + $0x3c] sm:$0x4] }
 0x24a   : > { %1209 = vst [vmem:[#allocation2 + $0x2c] sm:$0x4] %v1208_v53 }
 0x24b   : > { %v1031_v57 = vpop.permute.xlu0 %1030 }
 0x24c   : > { %v1058_v59 = vsel %vm2534_vm10, %v1031_v57, %v1057_v55  ;;  %v559_v60 = vpop.permute.xlu1 %558  ;;  %v1021_v57 = vld [vmem:[#allocation2 + $0x3c] sm:$0x1] }
 0x24d   : > { %1059 = vst [vmem:[#allocation2 + $0x1c] sm:$0x2] %v1058_v59  ;;  %v593_v61 = vsel %vm2534_vm10, %v559_v60, %v592_v12 }
 0x24e   : > { %594 = vst [vmem:[#allocation2 + $0x38] sm:$0x2] %v593_v61 }
 0x24f   : > { %v1223_v1 = vpop.permute.xlu0 %1222 }
 0x250   : > { %v1250_v2 = vsel %vm2547_vm13, %v1223_v1, %v1249_v62  ;;  %v761_v3 = vpop.permute.xlu1 %760  ;;  %v743_v35 = vld [vmem:[#allocation2 + $0x38] sm:$0x4] }
 0x251   : > { %1251 = vst [vmem:[#allocation2 + $0x1c] sm:$0x8] %v1250_v2  ;;  %v795_v33 = vsel %vm2547_vm13, %v761_v3, %v794_v0  ;;  %v1977_v6 = vld [vmem:[#allocation2 + $0x28] sm:$0xff]  }
 0x252   : > { %796 = vst [vmem:[#allocation2 + $0x38] sm:$0x8] %v795_v33  ;;  %1872 = vmatpush3.bf16.msra.mxu1 %v1977_v6 }
 0x253   : > { %v1085_v8 = vpop.permute.xlu0 %1084  ;;  %1877 = vmatprep.subr.bf16.mxu1 %v2127_v48 }
 0x254   : > { %v1115_v9 = vsel %vm2563_vm2, %v1085_v8, %v1114_v22  ;;  %v1127_v10 = vpop.permute.xlu1 %1126  ;;  %v1105_v37 = vld [vmem:[#allocation2 + $0x1c] sm:$0x2] }
 0x255   : > { %1116 = vst [vmem:[#allocation2 + $0x34] sm:$0x2] %v1115_v9  ;;  %v1154_v11 = vsel %vm2527_vm9, %v1127_v10, %v1153_v7  ;;  %1874 = vmatmul.mubr.msk.bf16.vlgmr.msra.gmra.mxu1 %vm1339_vm5, %v1978_v26  ;;  %v642_v24 = vld [vmem:[#allocation2 + $0x38] sm:$0x2]  ;;  %v1557_v9 = vld [vmem:[#allocation6 + $0x40] sm:$0xff] }
 0x256   : > { %1155 = vst [vmem:[#allocation2 + $0x1c] sm:$0x4] %v1154_v11  ;;  %1879 = vmatprep.mubr.msk.bf16.mxu1 %vm2128_vm4, %v2127_v48  ;;  %vm1721_vm4 = vcmask 7168  }
 0x257   : > { %v1277_v16 = vpop.permute.xlu0 %1276 }
 0x258   : > { %v1307_v17 = vsel %vm2581_vm7, %v1277_v16, %v1306_v13  ;;  %v989_v20 = vpop.permute.xlu1 %988  ;;  %v1297_v3 = vld [vmem:[#allocation2 + $0x1c] sm:$0x8]  ;;  %v1558_v13 = vld [vmem:[#allocation6 + $0x48] sm:$0xff] }
 0x259   : > { %1308 = vst [vmem:[#allocation2 + $0x34] sm:$0x8] %v1307_v17  ;;  %v1019_v23 = vsel %vm2558_vm0, %v989_v20, %v1018_v18  ;;  %v844_v30 = vld [vmem:[#allocation2 + $0x38] sm:$0x8]  ;;  %v1559_v20 = vld [vmem:[#allocation6 + $0x50] sm:$0xff] }
 0x25a   : > { %1020 = vst [vmem:[#allocation2 + $0x34] sm:$0x1] %v1019_v23 }
 0x25b   : > { %v610_v21 = vpop.permute.xlu0 %609 }
 0x25c   : > { %v643_v58 = vsel %vm2563_vm2, %v610_v21, %v642_v24  ;;  %v1181_v25 = vpop.permute.xlu1 %1180 }
 0x25d   : > { %644 = vst [vmem:[#allocation2 + $0x38] sm:$0x2] %v643_v58  ;;  %v1211_v48 = vsel %vm2576_vm1, %v1181_v25, %v1210_v28  ;;  %v1201_v33 = vld [vmem:[#allocation2 + $0x1c] sm:$0x4] }
 0x25e   : > { %1212 = vst [vmem:[#allocation2 + $0x34] sm:$0x4] %v1211_v48  ;;  %v1560_v58 = vld [vmem:[#allocation6 + $0x58] sm:$0xff] }
 0x25f   : > { %v812_v29 = vpop.permute.xlu0 %811 }
 0x260   : > { %v845_v31 = vsel %vm2581_vm7, %v812_v29, %v844_v30  ;;  %v509_v32 = vpop.permute.xlu1 %508 }
 0x261   : > { %846 = vst [vmem:[#allocation2 + $0x38] sm:$0x8] %v845_v31  ;;  %v542_v36 = vsel %vm2558_vm0, %v509_v32, %v541_v34  ;;  %v1561_v31 = vld [vmem:[#allocation6 + $0x60] sm:$0xff] }
 0x262   : > { %543 = vst [vmem:[#allocation2 + $0x38] sm:$0x1] %v542_v36 }
 0x263   : > { %v1079_v38 = vpop.permute.xlu0 %1078 }
 0x264   : > { %v1106_v39 = vsel %vm2563_vm2, %v1079_v38, %v1105_v37  ;;  %v711_v40 = vpop.permute.xlu1 %710  ;;  %v1562_v37 = vld [vmem:[#allocation6 + $0x68] sm:$0xff] }
 0x265   : > { %1107 = vst [vmem:[#allocation2 + $0x1c] sm:$0x2] %v1106_v39  ;;  %v744_v19 = vsel %vm2576_vm1, %v711_v40, %v743_v35  ;;  %v1979_v42 = vld [vmem:[#allocation2 + $0x30] sm:$0xff]  }
 0x266   : > { %745 = vst [vmem:[#allocation2 + $0x38] sm:$0x4] %v744_v19  ;;  %1878 = vmatpush3.bf16.msra.mxu1 %v1979_v42  ;;  %v1549_v42 = vld [vmem:[#allocation6] sm:$0xff] }
 0x267   : > { %v1039_v43 = vpop.permute.xlu0 %1038 }
 0x268   : > { %v1070_v44 = vsel %vm2534_vm10, %v1039_v43, %v1069_v41  ;;  %v983_v46 = vpop.permute.xlu1 %982  ;;  %v1563_v41 = vld [vmem:[#allocation6 + $0x70] sm:$0xff] }
 0x269   : > { %1071 = vst [vmem:[#allocation2 + $0x3c] sm:$0x2] %v1070_v44  ;;  %v1010_v49 = vsel %vm2558_vm0, %v983_v46, %v1009_v45  ;;  %1880 = vmatmul.mubr.msk.bf16.vlgmr.msra.gmra.mxu1 %vm1339_vm5, %v1980_v47  ;;  %v1564_v46 = vld [vmem:[#allocation6 + $0x78] sm:$0xff] }
 0x26a   : > { %1011 = vst [vmem:[#allocation2 + $0x1c] sm:$0x1] %v1010_v49 }
 0x26b   : > { %v1231_v51 = vpop.permute.xlu0 %1230 }
 0x26c   : > { %v1262_v52 = vsel %vm2547_vm13, %v1231_v51, %v1261_v27  ;;  %v1135_v53 = vpop.permute.xlu1 %1134  ;;  %v1550_v27 = vld [vmem:[#allocation6 + $0x8] sm:$0xff] }
 0x26d   : > { %1263 = vst [vmem:[#allocation2 + $0x3c] sm:$0x8] %v1262_v52  ;;  %v1166_v56 = vsel %vm2527_vm9, %v1135_v53, %v1165_v50  ;;  %v1551_v50 = vld [vmem:[#allocation6 + $0x10] sm:$0xff] }
 0x26e   : > { %1167 = vst [vmem:[#allocation2 + $0x3c] sm:$0x4] %v1166_v56 }
 0x26f   : > { %v1087_v55 = vpop.permute.xlu0 %1086 }
 0x270   : > { %v1117_v12 = vld [vmem:[#allocation2 + $0x3c] sm:$0x2]  ;;  %v991_v59 = vpop.permute.xlu1 %990 }
 0x271   : > { %v1118_v60 = vsel %vm2563_vm2, %v1087_v55, %v1117_v12  ;;  %v1022_v61 = vsel %vm2558_vm0, %v991_v59, %v1021_v57  ;;  %v1552_v59 = vld [vmem:[#allocation6 + $0x18] sm:$0xff] }
 0x272   : > { %1119 = vst [vmem:[#allocation2 + $0x3c] sm:$0x2] %v1118_v60  ;;  %1023 = vst [vmem:[#allocation2 + $0x3c] sm:$0x1] %v1022_v61  ;;  %v1553_v60 = vld [vmem:[#allocation6 + $0x20] sm:$0xff] }
 0x273   : > { %v1279_v63 = vpop.permute.xlu0 %1278 }
 0x274   : > { %v1309_v62 = vld [vmem:[#allocation2 + $0x3c] sm:$0x8]  ;;  %v1183_v0 = vpop.permute.xlu1 %1182 }
 0x275   : > { %v1310_v54 = vsel %vm2581_vm7, %v1279_v63, %v1309_v62  ;;  %v1213_v1 = vld [vmem:[#allocation2 + $0x3c] sm:$0x4] }
 0x276   : > { %1311 = vst [vmem:[#allocation2 + $0x3c] sm:$0x8] %v1310_v54  ;;  %v1214_v2 = vsel %vm2576_vm1, %v1183_v0, %v1213_v1  ;;  %v1554_v54 = vld [vmem:[#allocation6 + $0x28] sm:$0xff]  ;;  %v1555_v1 = vld [vmem:[#allocation6 + $0x30] sm:$0xff] }
 0x277   : > { %1215 = vst [vmem:[#allocation2 + $0x3c] sm:$0x4] %v1214_v2  ;;  %v1271_v5 = vpop.permute.xlu0 %1270 }
 0x278   : > { %v1298_v4 = vsel %vm2581_vm7, %v1271_v5, %v1297_v3  ;;  %v1175_v6 = vpop.permute.xlu1 %1174 }
 0x279   : > { %1299 = vst [vmem:[#allocation2 + $0x1c] sm:$0x8] %v1298_v4  ;;  %v1202_v7 = vsel %vm2576_vm1, %v1175_v6, %v1201_v33  ;;  %v1556_v33 = vld [vmem:[#allocation6 + $0x38] sm:$0xff] }
 0x27a   : > { %1203 = vst [vmem:[#allocation2 + $0x1c] sm:$0x4] %v1202_v7 }
 0x27e   : > { %v1981_v22 = vld [vmem:[#allocation2 + $0x38] sm:$0xff]  }
 0x27f   : > { %1884 = vmatpush3.bf16.msra.mxu0 %v1981_v22 }
 0x281   : > { %v1982_v8 = vld [vmem:[#allocation2 + $0x18] sm:$0xff]  }
 0x282   : > { %1886 = vmatmul.mubr.msk.bf16.vlgmr.msra.gmra.mxu0 %vm1339_vm5, %v1982_v8 }
 0x2c5   : > { %v1377_v10 = vpop.f32.mrf.mxu1 }
 0x2c6   : > { %v1573_v26 = vmul.f32 %v1557_v9, %v1377_v10  ;;  %v1565_v47 = vmul.f32 %v1549_v42, %v1377_v10 }
 0x2c7   : > { %v1869_v11 = vpop.f32.mrf.mxu1 }
 0x2c8   : > { %v1605_v15 = vsel %vm1339_vm5, %v1573_v26, 0.0  ;;  %v1581_v12 = vsel %vm1339_vm5, %v1565_v47, 0.0 }
 0x2c9   : > { %v1380_v16 = vpop.f32.mrf.mxu1  ;;  %1606 = vadd.xlane.f32.xlu1 %v1605_v15 }
 0x2ca   : > { %v1574_v17 = vmul.f32 %v1558_v13, %v1380_v16  ;;  %v1566_v56 = vmul.f32 %v1550_v27, %v1380_v16 }
 0x2cb   : > { %v1870_v18 = vpop.f32.mrf.mxu1 }
 0x2cc   : > { %v1608_v14 = vsel %vm1339_vm5, %v1574_v17, 0.0  ;;  %v1584_v0 = vsel %vm1339_vm5, %v1566_v56, 0.0 }
 0x2cd   : > { %1609 = vadd.xlane.f32.xlu0 %v1608_v14 }
 0x315   : > { %v1432_v23 = vpop.f32.mrf.mxu1 }
 0x316   : > { %v1575_v21 = vmul.f32 %v1559_v20, %v1432_v23  ;;  %v1567_v55 = vmul.f32 %v1551_v50, %v1432_v23  ;;  %v1691_v50 = vld [vmem:[%s2972_s4] sm:$0x1] }
 0x317   : > { %v1875_v24 = vpop.f32.mrf.mxu1 }
 0x318   : > { %v1611_v28 = vsel %vm1339_vm5, %v1575_v21, 0.0  ;;  %v1587_v62 = vsel %vm1339_vm5, %v1567_v55, 0.0 }
 0x319   : > { %v1435_v25 = vpop.f32.mrf.mxu1  ;;  %1612 = vadd.xlane.f32.xlu0 %v1611_v28 }
 0x31a   : > { %v1576_v48 = vmul.f32 %v1560_v58, %v1435_v25  ;;  %v1568_v61 = vmul.f32 %v1552_v59, %v1435_v25 }
 0x31b   : > { %v1876_v29 = vpop.f32.mrf.mxu1 }
 0x31c   : > { %v1614_v30 = vsel %vm1339_vm5, %v1576_v48, 0.0  ;;  %v1590_v4 = vsel %vm1339_vm5, %v1568_v61, 0.0 }
 0x31d   : > { %1615 = vadd.xlane.f32.xlu1 %v1614_v30 }
 0x329   : > { %v1487_v32 = vpop.f32.mrf.mxu1 }
 0x32a   : > { %v1577_v34 = vmul.f32 %v1561_v31, %v1487_v32  ;;  %v1569_v63 = vmul.f32 %v1553_v60, %v1487_v32 }
 0x32b   : > { %v1881_v36 = vpop.f32.mrf.mxu1 }
 0x32c   : > { %v1617_v38 = vsel %vm1339_vm5, %v1577_v34, 0.0  ;;  %v1593_v5 = vsel %vm1339_vm5, %v1569_v63, 0.0 }
 0x32d   : > { %1618 = vadd.xlane.f32.xlu0 %v1617_v38  ;;  %v1490_v39 = vpop.f32.mrf.mxu1 }
 0x32e   : > { %v1578_v35 = vmul.f32 %v1562_v37, %v1490_v39  ;;  %v1570_v2 = vmul.f32 %v1554_v54, %v1490_v39 }
 0x32f   : > { %v1882_v40 = vpop.f32.mrf.mxu1 }
 0x330   : > { %v1620_v19 = vsel %vm1339_vm5, %v1578_v35, 0.0  ;;  %v1596_v22 = vsel %vm1339_vm5, %v1570_v2, 0.0 }
 0x331   : > { %1621 = vadd.xlane.f32.xlu1 %v1620_v19 }
 0x342   : > { %v1542_v43 = vpop.f32.mrf.mxu0 }
 0x343   : > { %v1579_v44 = vmul.f32 %v1563_v41, %v1542_v43  ;;  %v1571_v3 = vmul.f32 %v1555_v1, %v1542_v43 }
 0x344   : > { %v1887_v45 = vpop.f32.mrf.mxu0 }
 0x345   : > { %v1623_v49 = vsel %vm1339_vm5, %v1579_v44, 0.0  ;;  %v1599_v7 = vsel %vm1339_vm5, %v1571_v3, 0.0 }
 0x346   : > { %1624 = vadd.xlane.f32.xlu0 %v1623_v49  ;;  %v1545_v51 = vpop.f32.mrf.mxu0 }
 0x347   : > { %v1580_v52 = vmul.f32 %v1564_v46, %v1545_v51  ;;  %v1572_v6 = vmul.f32 %v1556_v33, %v1545_v51 }
 0x348   : > { %v1888_v53 = vpop.f32.mrf.mxu0 }
 0x349   : > { %v1626_v57 = vsel %vm1339_vm5, %v1580_v52, 0.0  ;;  %v1602_v8 = vsel %vm1339_vm5, %v1572_v6, 0.0 }
 0x34a   : > { %1582 = vadd.xlane.f32.xlu0 %v1581_v12  ;;  %1627 = vadd.xlane.f32.xlu1 %v1626_v57 }
 0x34e   : > { %1588 = vadd.xlane.f32.xlu0 %v1587_v62  ;;  %1585 = vadd.xlane.f32.xlu1 %v1584_v0 }
 0x352   : > { %1594 = vadd.xlane.f32.xlu0 %v1593_v5  ;;  %1591 = vadd.xlane.f32.xlu1 %v1590_v4  ;;  %v1607_v9 = vpop.xlane.xlu1 %1606 }
 0x356   : > { %1600 = vadd.xlane.f32.xlu0 %v1599_v7  ;;  %1597 = vadd.xlane.f32.xlu1 %v1596_v22  ;;  %v1610_v10 = vpop.xlane.xlu0 %1609 }
 0x357   : > { %v1657_v17 = vadd.f32 %v1610_v10, %v1607_v9 }
 0x359   : > { %v1658_v20 = vrot.slane %v1657_v17, 4 }
 0x35a   : > { %1603 = vadd.xlane.f32.xlu1 %v1602_v8 }
 0x35b   : > { %v1659_v24 = vadd.f32 %v1658_v20, %v1657_v17 }
 0x35d   : > { %v1660_v25 = vrot.slane %v1659_v24, 2 }
 0x35f   : > { %v1661_v32 = vadd.f32 %v1660_v25, %v1659_v24 }
 0x361   : > { %v1662_v39 = vrot.slane %v1661_v32, 1 }
 0x363   : > { %v1663_v42 = vadd.f32 %v1662_v39, %v1661_v32 }
 0x3a2   : > { %v1613_v11 = vpop.xlane.xlu0 %1612 }
 0x3a6   : > { %v1616_v26 = vpop.xlane.xlu1 %1615 }
 0x3a7   : > { %v1664_v15 = vadd.f32 %v1616_v26, %v1613_v11 }
 0x3a9   : > { %v1665_v14 = vrot.slane %v1664_v15, 4 }
 0x3ab   : > { %v1666_v21 = vadd.f32 %v1665_v14, %v1664_v15 }
 0x3ad   : > { %v1667_v28 = vrot.slane %v1666_v21, 2 }
 0x3af   : > { %v1668_v29 = vadd.f32 %v1667_v28, %v1666_v21 }
 0x3b1   : > { %v1669_v37 = vrot.slane %v1668_v29, 1 }
 0x3b3   : > { %v1670_v19 = vadd.f32 %v1669_v37, %v1668_v29 }
 0x3b5   : > { %v1688_v45 = vadd.f32 %v1670_v19, %v1663_v42 }
 0x3b6   : > { %v1619_v16 = vpop.xlane.xlu0 %1618 }
 0x3ba   : > { %v1622_v13 = vpop.xlane.xlu1 %1621 }
 0x3bb   : > { %v1671_v18 = vadd.f32 %v1622_v13, %v1619_v16 }
 0x3bd   : > { %v1672_v23 = vrot.slane %v1671_v18, 4 }
 0x3bf   : > { %v1673_v58 = vadd.f32 %v1672_v23, %v1671_v18 }
 0x3c1   : > { %v1674_v48 = vrot.slane %v1673_v58, 2 }
 0x3c3   : > { %v1675_v34 = vadd.f32 %v1674_v48, %v1673_v58 }
 0x3c5   : > { %v1676_v35 = vrot.slane %v1675_v34, 1 }
 0x3c7   : > { %v1677_v43 = vadd.f32 %v1676_v35, %v1675_v34 }
 0x3c9   : > { %v1689_v47 = vadd.f32 %v1688_v45, %v1677_v43 }
 0x3cf   : > { %v1625_v30 = vpop.xlane.xlu0 %1624 }
 0x3d3   : > { %v1628_v31 = vpop.xlane.xlu1 %1627  ;;  %v1583_v53 = vpop.xlane.xlu0 %1582 }
 0x3d4   : > { %v1678_v36 = vadd.f32 %v1628_v31, %v1625_v30 }
 0x3d6   : > { %v1679_v38 = vrot.slane %v1678_v36, 4 }
 0x3d7   : > { %v1586_v52 = vpop.xlane.xlu1 %1585  ;;  %v1589_v55 = vpop.xlane.xlu0 %1588 }
 0x3d8   : > { %v1680_v40 = vadd.f32 %v1679_v38, %v1678_v36  ;;  %v1629_v61 = vadd.f32 %v1586_v52, %v1583_v53 }
 0x3da   : > { %v1681_v41 = vrot.slane %v1680_v40, 2  ;;  %v1630_v1 = vrot.slane %v1629_v61, 4 }
 0x3db   : > { %v1592_v56 = vpop.xlane.xlu1 %1591  ;;  %v1595_v57 = vpop.xlane.xlu0 %1594 }
 0x3dc   : > { %v1682_v44 = vadd.f32 %v1681_v41, %v1680_v40  ;;  %v1636_v59 = vadd.f32 %v1592_v56, %v1589_v55  ;;  %v1631_v4 = vadd.f32 %v1630_v1, %v1629_v61 }
 0x3de   : > { %v1683_v46 = vrot.slane %v1682_v44, 1  ;;  %v1637_v0 = vrot.slane %v1636_v59, 4  ;;  %v1632_v22 = vrot.slane %v1631_v4, 2 }
 0x3df   : > { %v1598_v12 = vpop.xlane.xlu1 %1597  ;;  %v1601_v62 = vpop.xlane.xlu0 %1600 }
 0x3e0   : > { %v1684_v49 = vadd.f32 %v1683_v46, %v1682_v44  ;;  %v1643_v63 = vadd.f32 %v1598_v12, %v1595_v57  ;;  %v1638_v3 = vadd.f32 %v1637_v0, %v1636_v59  ;;  %v1633_v26 = vadd.f32 %v1632_v22, %v1631_v4 }
 0x3e2   : > { %v1690_v27 = vadd.f32 %v1689_v47, %v1684_v49  ;;  %v1644_v2 = vrot.slane %v1643_v63, 4  ;;  %v1639_v6 = vrot.slane %v1638_v3, 2  ;;  %v1634_v16 = vrot.slane %v1633_v26, 1 }
 0x3e3   : > { %v1604_v60 = vpop.xlane.xlu1 %1603 }
 0x3e4   : > { %v1693_v51 = vadd.f32 %v1691_v50, %v1690_v27  ;;  %v1650_v54 = vadd.f32 %v1604_v60, %v1601_v62  ;;  %v1645_v33 = vadd.f32 %v1644_v2, %v1643_v63  ;;  %v1640_v9 = vadd.f32 %v1639_v6, %v1638_v3 }
 0x3e5   : > { %v1635_v20 = vadd.f32 %v1634_v16, %v1633_v26 }
 0x3e6   : > { %1695 = vrot.lane.b32.xlu0 %v1693_v51, %s2129_s17  ;;  %v1651_v5 = vrot.slane %v1650_v54, 4  ;;  %v1646_v8 = vrot.slane %v1645_v33, 2  ;;  %v1641_v13 = vrot.slane %v1640_v9, 1 }
 0x3e8   : > { %v1652_v7 = vadd.f32 %v1651_v5, %v1650_v54  ;;  %v1647_v11 = vadd.f32 %v1646_v8, %v1645_v33  ;;  %v1642_v18 = vadd.f32 %v1641_v13, %v1640_v9 }
 0x3ea   : > { %v1653_v10 = vrot.slane %v1652_v7, 2  ;;  %v1648_v17 = vrot.slane %v1647_v11, 1  ;;  %v1685_v24 = vadd.f32 %v1642_v18, %v1635_v20 }
 0x3ec   : > { %v1654_v15 = vadd.f32 %v1653_v10, %v1652_v7  ;;  %v1649_v23 = vadd.f32 %v1648_v17, %v1647_v11 }
 0x3ee   : > { %v1655_v14 = vrot.slane %v1654_v15, 1  ;;  %v1686_v58 = vadd.f32 %v1685_v24, %v1649_v23 }
 0x3f0   : > { %v1656_v21 = vadd.f32 %v1655_v14, %v1654_v15 }
 0x3f2   : > { %v1687_v28 = vadd.f32 %v1686_v58, %v1656_v21 }
 0x3f4   : > { %v1692_v25 = vadd.f32 %v1691_v50, %v1687_v28 }
 0x458   : > { %v1696_v48 = vpop.permute.xlu0 %1695 }
 0x459   : > { %v1698_v29 = vmax.f32 %v1692_v25, %v1696_v48 }
 0x45b   : > { %v1699_v30 = vsub.f32 %v1692_v25, %v1698_v29  ;;  %1703 = vrot.lane.b32.xlu1 %v1698_v29, %s2130_s23 }
 0x45d   : > { %v1700_v37 = vmul.f32 1.442695, %v1699_v30 }
 0x4cd   : > { %v1704_v31 = vpop.permute.xlu1 %1703 }
 0x4ce   : > { %v1706_v32 = vsub.f32 %v1693_v51, %v1704_v31 }
 0x4d0   : > { %v1707_v34 = vmul.f32 1.442695, %v1706_v32 }
 0x4d2   : > { %1983 = vpow2.f32 %v1707_v34 }
 0x4d3   : > { %1985 = vpow2.f32 %v1700_v37 }
 0x4df   : > { %v1984_v36 = vpop.eup %1983 }
 0x4e0   : > { %1710 = vrot.lane.b32.xlu1 %v1984_v36, %s2129_s17  ;;  %v1986_v38 = vpop.eup %1985 }
 0x552   : > { %v1711_v39 = vpop.permute.xlu1 %1710 }
 0x553   : > { %v1713_v35 = vadd.f32 %v1986_v38, %v1711_v39 }
 0x555   : > { %1987 = vrcp.f32 %v1713_v35 }
 0x562   : > { %v1988_v40 = vpop.eup %1987 }
 0x563   : > { %1717 = vrot.lane.b32.xlu0 %v1988_v40, %s2130_s23  ;;  %v1715_v19 = vmul.f32 %v1988_v40, %v1986_v38 }
 0x5d5   : > { %v1718_v41 = vpop.permute.xlu0 %1717 }
 0x5d6   : > { %v1720_v42 = vmul.f32 %v1984_v36, %v1718_v41 }
 0x5d8   : > { %v1722_v43 = vsel %vm1721_vm4, %v1715_v19, %v1720_v42 }
 0x5d9   : > { %1724 = vst.msk [vmem:[%s256_s24] sm:$0x1] %vm1723_vm8, %v1722_v43 }
 0x5da   : > { %2056 = shalt.err (!%p2053_p0)
}
 0x5db   : > { %s2057_s12 = scalar_lea.hbm %s2931_s7, 16  ;;  %s2061_s9 = scalar_lea.hbm %s2973_s5, 32 }
 0x5dc   : > { %p2058_p5 = scmp.ne.s32.totalorder %s2931_s7, %s2057_s12  ;;  %p2062_p4 = scmp.lt.s32.totalorder %s2931_s7, %s2973_s5 }
 0x5dd   : > { %p2063_p6 = scmp.lt.s32.totalorder %s2061_s9, %s2057_s12 }
 0x5de   : > { %p2059_p2 = pnand %p2058_p5, %p3007_p11 }
 0x5df   : > { %p2064_p8 = por %p2063_p6, %p2062_p4 }
 0x5e0   : > { %p2060_p1 = pneg %p2059_p2 }
 0x5e2   : > { %p2065_p3 = pnand %p2064_p8, %p2060_p1 }
 0x5e4   : > { %2068 = shalt.err (!%p2065_p3)
}
 0x5e5   : > { %1895 = dma.vmem_to_hbm [thread:$0]  (%p3007_p11), %s1739_s10, 16, %s2931_s7, %s1726_s8  }
 0x5e6 PF: > { %s1750_s26 = sand.u32 1, %s2099_s18   ;;  %p3008_p7 = scmp.ne.s32.totalorder %s2980_s25, 0 }
 0x5e7   : > { %p3009_p9 = scmp.ge.s32.totalorder %s2111_s21, 2  ;;  %s1751_s24 = scalar_lea.sflag [#allocation5], %s1750_s26 }
 0x5e9   : > { %p1906_p10 = pnand %p3009_p9, %p3008_p7 }
 0x5eb   : > { %p1907_p12 = pneg %p1906_p10 }
 0x5ed   : > { %2094 = dma.done.wait (%p1907_p12), %s1751_s24, 16  }
 0x5ee   : > { %2096 = vsyncadd (%p1907_p12), %s1751_s24, 4294967280  ;;  %p19_p13 = scmp.ge.s32.totalorder %s2216_s30, 4   ;;  %s3010_s18 = smov %s2103_s19 }
 0x5ef   : > { %s3011_s19 = smov %s2107_s20  ;;  %s3012_s20 = smov %s2236_s13 }
 0x5f0   : > { %s3013_s21 = smov %s2216_s30  ;;  %21 = sbr.rel (!%p19_p13) target bundleno = 6 (0x6), region = 89 }
 0x5f5   :  { %1755 = vsyncpa [#allocation4], 1 }
 0x5f6   :  { %1757 = vsyncpa [#allocation4 + $0x1], 1 }
 0x5f7   :  { %1758 = vsyncpa [#allocation7], 1 }
 0x5f8   :  { %1759 = vsyncpa [#allocation5], 1 }
 0x5f9   :  { %1761 = vsyncpa [#allocation5 + $0x1], 1 }

</bundles_post_ra>
